<compile_context>
chip_gen: v7x
topology: tpu7x:2x2x1
jax: 0.10.0
libtpu: 0.0.40
codegen_flags: <defaults>
</compile_context>

<pallas_src>
import functools
import math

import jax
import jax.numpy as jnp
import numpy as np
from jax import lax
from jax.experimental import pallas as pl
from jax.experimental.pallas import tpu as pltpu


# ------------------------------ Pallas kernel ------------------------------ #

def _enhance_kernel(x_hbm, lrow_ref, lcol_ref, w_in_ref, b_in_ref,
                    w_blk_ref, b_blk_ref, w_out_ref, b_out_ref,
                    out_ref, xbuf, patch_ref, sem,
                    *, layers, height, width, halo, strip_rows, rows_buf,
                    padded_rows, channels):
    """One (batch, row-strip) grid step of the fused EnhanceNetwork forward.

    x_hbm:     (C, B*Hp*W) row-padded input, left in HBM (pl.ANY); manually DMA'd.
    lrow/lcol: (C, S_buf) int32 local row / column index of every buffer position.
    w_*:       (C, 9*C) flattened 3x3 weights (bias / eval-BN folded), b_*: (C, 1).
    out_ref:   (C, strip_rows*W) lane-dense output block for this strip.
    xbuf:      VMEM scratch (C, S_buf) holding the halo'd input strip.
    patch_ref: VMEM scratch (9*C, S_buf) im2col patch matrix, reused by every conv.
    """
    C, W, H = channels, width, height
    S = rows_buf * W                     # flattened strip length (incl. halo rows)
    tile = strip_rows * W                # flattened valid-output length

    b = pl.program_id(0)
    s = pl.program_id(1)

    # ---- manual DMA of the halo'd input strip (host pre-pads rows -> always in-bounds)
    start = b * (padded_rows * W) + s * tile
    cp = pltpu.make_async_copy(x_hbm.at[:, pl.ds(start, S)], xbuf, sem.at[0])
    cp.start()
    cp.wait()

    # ---- boundary masks: built ONCE per strip at full (C, S) (no per-conv broadcasts)
    # rmask zeroes rows lying outside the image (emulates each conv's zero padding at
    # the image top/bottom); cmask_l / cmask_r zero the taps reading column x-1 / x+1
    # across the image's left / right edge.
    row0 = s * strip_rows - halo                       # image row of buffer row 0
    y = lrow_ref[...] + row0
    rmask = jnp.where((y >= 0) & (y < H), 1.0, 0.0)
    col = lcol_ref[...]
    cmask_l = jnp.where(col > 0, 1.0, 0.0)
    cmask_r = jnp.where(col < W - 1, 1.0, 0.0)

    def conv3x3(fea, w):
        # 3x3 "same" conv: zero out-of-image rows once, 2 masked horizontal rolls,
        # 6 vertical rolls, all written into one persistent (9*C, S) patch scratch,
        # then a single (C,9C)x(9C,S) MXU matmul (contraction kept whole).
        # TODO(synk): when W is a multiple of 128 lanes, the 6 vertical (+-W) rolls
        # can become static vreg-aligned slices of a row-guarded scratch buffer.
        fm = fea * rmask                                      # out-of-image rows -> 0
        g = (pltpu.roll(fm, shift=1, axis=1) * cmask_l,       # dx = -1
             fm,                                              # dx =  0 (no mask)
             pltpu.roll(fm, shift=S - 1, axis=1) * cmask_r)   # dx = +1
        for ky in range(3):
            vshift = ((1 - ky) * W) % S                       # roll by -dy*W, dy=ky-1
            for kx in range(3):
                tap = ky * 3 + kx
                piece = g[kx] if vshift == 0 else pltpu.roll(g[kx], shift=vshift, axis=1)
                patch_ref[tap * C:(tap + 1) * C, :] = piece
        return jnp.dot(w, patch_ref[...], preferred_element_type=jnp.float32)

    # fea = ReLU(in_conv(x))   (x's out-of-image halo rows are already zero)
    x = xbuf[...]
    fea = jnp.maximum(conv3x3(x, w_in_ref[...]) + b_in_ref[...], 0.0)

    # fea = fea + ReLU(BN(conv(fea)))  -- the PyTorch module appends the SAME conv
    # module `layers` times, so every block shares one weight/bias (BN folded).
    w_blk = w_blk_ref[...]
    b_blk = b_blk_ref[...]
    for _ in range(layers):
        fea = fea + jnp.maximum(conv3x3(fea, w_blk) + b_blk, 0.0)

    # illu = clamp(sigmoid(out_conv(fea)) + x, 1e-4, 1); store only the valid rows.
    z = conv3x3(fea, w_out_ref[...]) + b_out_ref[...]
    lo = halo * W
    sig = 0.5 * jnp.tanh(0.5 * z[:, lo:lo + tile]) + 0.5      # sigmoid on the EUP
    out_ref[...] = jnp.clip(sig + xbuf[:, lo:lo + tile], 0.0001, 1.0)


# ---------------------------- host-side helpers ----------------------------- #

def _fold_params(p, eps=1e-5):
    """Flatten OIHW 3x3 weights to (Cout, 9*Cin) and fold bias / eval-BN in."""
    C = p["in_w"].shape[0]
    assert p["blk_w"].shape[0] == p["blk_w"].shape[1] == C  # residual needs Cin==Cout

    def flat(w_oihw, cin_pad, cout_pad):
        o, i, kh, kw = w_oihw.shape
        w = jnp.transpose(w_oihw, (0, 2, 3, 1))              # (O, KH, KW, I)
        w = jnp.pad(w, ((0, cout_pad - o), (0, 0), (0, 0), (0, cin_pad - i)))
        return w.reshape(cout_pad, kh * kw * cin_pad)        # col = (ky*3+kx)*Cin + ci

    # in_conv: pad Cin 3 -> C (the image channel rows are zero-padded to match)
    w_in = flat(p["in_w"], C, C)
    b_in = jnp.reshape(p["in_b"], (C, 1))

    # block conv: fold eval-mode BatchNorm (running stats) into weight + bias
    # TODO(synk): training-mode BatchNorm batch statistics are not reproduced.
    scale = p["bn_gamma"] / jnp.sqrt(p["bn_var"] + eps)
    w_blk = flat(p["blk_w"], C, C) * scale[:, None]
    b_blk = jnp.reshape(p["blk_b"] * scale + p["bn_beta"] - p["bn_mean"] * scale,
                        (C, 1))

    # out_conv: pad Cout 3 -> C (extra rows are zero, sliced off in the epilogue)
    w_out = flat(p["out_w"], C, C)
    b_out = jnp.reshape(jnp.pad(p["out_b"], (0, C - p["out_b"].shape[0])), (C, 1))
    return w_in, b_in, w_blk, b_blk, w_out, b_out


def _pick_strip_rows(H, W, C, halo, patch_budget_bytes=9 << 20):
    """Largest divisor of H whose halo'd f32 patch fits the VMEM budget and whose
    output block is lane-tileable (rows*W % 128 == 0, or rows == H)."""
    best = None
    for r in range(1, H + 1):
        if H % r:
            continue
        if (r * W) % 128 != 0 and r != H:
            continue
        if 4 * 9 * C * (r + 2 * halo) * W <= patch_budget_bytes:
            best = r
    return best if best is not None else H


# ------------------------------ forward pass -------------------------------- #

@functools.partial(jax.jit, static_argnames=("layers", "strip_rows"))
def enhance_forward_pallas(x_nhwc, p, layers, strip_rows=None):
    B, H, W, cin = x_nhwc.shape
    C = p["in_w"].shape[0]
    halo = layers + 2                         # one extra halo row per fused conv
    if strip_rows is None:
        strip_rows = _pick_strip_rows(H, W, C, halo)
    assert H % strip_rows == 0, "strip_rows must divide H"
    assert (strip_rows * W) % 128 == 0 or strip_rows == H, (
        "output strip must be a multiple of 128 lanes (or the whole image)")
    n_strips = H // strip_rows

    # Round the strip buffer up so its flattened length is a multiple of 128 lanes
    # (aligned rolls / patch stores) whenever W allows it cheaply.
    rows_buf = strip_rows + 2 * halo
    step = 128 // math.gcd(W, 128)
    if step <= 16:
        rows_buf = ((rows_buf + step - 1) // step) * step
    S_buf = rows_buf * W
    pad_top = halo
    pad_bottom = rows_buf - strip_rows - halo          # >= halo by construction
    Hp = H + pad_top + pad_bottom
    tile = strip_rows * W

    # host-side layout: (C, B*Hp*W), channels zero-padded 3 -> C, rows zero-padded
    x_bchw = jnp.transpose(x_nhwc, (0, 3, 1, 2))
    x_pad = jnp.pad(x_bchw, ((0, 0), (0, C - cin), (pad_top, pad_bottom), (0, 0)))
    x_flat = jnp.transpose(x_pad, (1, 0, 2, 3)).reshape(C, B * Hp * W)

    # tiny per-position index arrays (loaded once; masks are derived in-kernel)
    q = np.arange(S_buf, dtype=np.int32)
    lrow = np.tile(q // W, (C, 1))
    lcol = np.tile(q % W, (C, 1))

    w_in, b_in, w_blk, b_blk, w_out, b_out = _fold_params(p)

    kern = functools.partial(
        _enhance_kernel, layers=layers, height=H, width=W, halo=halo,
        strip_rows=strip_rows, rows_buf=rows_buf, padded_rows=Hp, channels=C)

    def _full(shape):
        return pl.BlockSpec(shape, lambda b, s: (0,) * len(shape))

    out_flat = pl.pallas_call(
        kern,
        out_shape=jax.ShapeDtypeStruct((C, B * H * W), jnp.float32),
        grid_spec=pltpu.PrefetchScalarGridSpec(
            num_scalar_prefetch=0,
            grid=(B, n_strips),
            in_specs=[
                pl.BlockSpec(memory_space=pl.ANY),       # padded input (manual DMA)
                _full((C, S_buf)),                       # lrow
                _full((C, S_buf)),                       # lcol
                _full((C, 9 * C)), _full((C, 1)),        # in_conv
                _full((C, 9 * C)), _full((C, 1)),        # block conv (BN folded)
                _full((C, 9 * C)), _full((C, 1)),        # out_conv
            ],
            out_specs=pl.BlockSpec((C, tile),
                                   lambda b, s: (0, b * n_strips + s)),
            scratch_shapes=[
                pltpu.VMEM((C, S_buf), jnp.float32),       # input/activation strip
                pltpu.VMEM((9 * C, S_buf), jnp.float32),   # reused im2col patch
                pltpu.SemaphoreType.DMA((1,)),
            ],
        ),
        compiler_params=pltpu.CompilerParams(
            dimension_semantics=("parallel", "parallel"),   # megacore on v7x
            vmem_limit_bytes=48 * 1024 * 1024),             # safe on v7x's 64 MiB
    )(x_flat, jnp.asarray(lrow), jnp.asarray(lcol),
      w_in, b_in, w_blk, b_blk, w_out, b_out)

    out = out_flat.reshape(C, B, H, W)[:cin]                # drop padded channels
    return jnp.transpose(out, (1, 2, 3, 0))                 # NHWC


def enhance_forward_ref(x_nhwc, p, layers, eps=1e-5):
    """Pure-JAX (XLA) reference used only to validate the Pallas kernel."""
    def conv(x, w_oihw, b):
        return lax.conv_general_dilated(
            x, jnp.transpose(w_oihw, (2, 3, 1, 0)), (1, 1), "SAME",
            dimension_numbers=("NHWC", "HWIO", "NHWC"),
            precision=lax.Precision.HIGHEST) + b

    fea = jax.nn.relu(conv(x_nhwc, p["in_w"], p["in_b"]))
    scale = p["bn_gamma"] / jnp.sqrt(p["bn_var"] + eps)
    shift = p["bn_beta"] - p["bn_mean"] * scale
    for _ in range(layers):
        y = conv(fea, p["blk_w"], p["blk_b"]) * scale + shift
        fea = fea + jax.nn.relu(y)
    out = jax.nn.sigmoid(conv(fea, p["out_w"], p["out_b"]))
    return jnp.clip(out + x_nhwc, 0.0001, 1.0)


# ---------------------------- parameter setup ------------------------------- #

def init_params(key, channels):
    ks = jax.random.split(key, 10)
    p = {}
    p["in_w"] = 0.2 * jax.random.normal(ks[0], (channels, 3, 3, 3), jnp.float32)
    p["in_b"] = 0.05 * jax.random.normal(ks[1], (channels,), jnp.float32)
    # The PyTorch module appends the SAME `self.conv` module to every block,
    # so all blocks share one set of conv/BN parameters.
    p["blk_w"] = 0.1 * jax.random.normal(ks[2], (channels, channels, 3, 3), jnp.float32)
    p["blk_b"] = 0.05 * jax.random.normal(ks[3], (channels,), jnp.float32)
    p["bn_gamma"] = 1.0 + 0.1 * jax.random.normal(ks[4], (channels,), jnp.float32)
    p["bn_beta"] = 0.05 * jax.random.normal(ks[5], (channels,), jnp.float32)
    p["bn_mean"] = 0.1 * jax.random.normal(ks[6], (channels,), jnp.float32)
    p["bn_var"] = 1.0 + 0.1 * jnp.abs(jax.random.normal(ks[7], (channels,), jnp.float32))
    p["out_w"] = 0.1 * jax.random.normal(ks[8], (3, channels, 3, 3), jnp.float32)
    p["out_b"] = 0.05 * jax.random.normal(ks[9], (3,), jnp.float32)
    return p


# ----------------------------------- main ------------------------------------ #

if __name__ == "__main__":
    key = jax.random.PRNGKey(0)
    kx, kp = jax.random.split(key)

    B, H, W = 2, 16, 16
    layers, channels = 3, 8

    # PyTorch-style NCHW input in [0, 1]
    x_nchw = jax.random.uniform(kx, (B, 3, H, W), dtype=jnp.float32)
    x_nhwc = jnp.transpose(x_nchw, (0, 2, 3, 1))

    params = init_params(kp, channels)

    # strip_rows=8 -> 2 strips per image so the halo/grid path is exercised even at
    # this toy size (the auto-picker would choose the whole image here).
    out = enhance_forward_pallas(x_nhwc, params, layers=layers, strip_rows=8)
    out = jax.block_until_ready(out)
    assert out.shape == (B, H, W, 3) and out.dtype == jnp.float32

    ref = enhance_forward_ref(x_nhwc, params, layers)
    err = float(jnp.max(jnp.abs(out - ref)))
    # 5e-3 covers MXU f32-pass rounding across layers+2 convs; real tap/halo bugs
    # would show up as O(0.1) errors.
    assert err < 5e-3, f"max abs err vs reference = {err}"

    print("KERNEL_OK")
</pallas_src>

<mosaic_0001>
module attributes {stable_mosaic.version = 11 : i64} {
  func.func @_enhance_kernel(%arg0: i32, %arg1: i32, %arg2: memref<8x1024xf32, #tpu.memory_space<any>>, %arg3: memref<8x384xi32, #tpu.memory_space<vmem>>, %arg4: memref<8x384xi32, #tpu.memory_space<vmem>>, %arg5: memref<8x72xf32, #tpu.memory_space<vmem>>, %arg6: memref<8x1xf32, #tpu.memory_space<vmem>>, %arg7: memref<8x72xf32, #tpu.memory_space<vmem>>, %arg8: memref<8x1xf32, #tpu.memory_space<vmem>>, %arg9: memref<8x72xf32, #tpu.memory_space<vmem>>, %arg10: memref<8x1xf32, #tpu.memory_space<vmem>>, %arg11: memref<8x128xf32, #tpu.memory_space<vmem>>, %arg12: memref<8x384xf32, #tpu.memory_space<vmem>>, %arg13: memref<72x384xf32, #tpu.memory_space<vmem>>, %arg14: memref<1x!tpu.dma_semaphore, #tpu.memory_space<semaphore_mem>>) attributes {dimension_semantics = [#tpu.dimension_semantics<parallel>, #tpu.dimension_semantics<parallel>], iteration_bounds = array<i64: 2, 2>, scalar_prefetch = 0 : i64, scratch_operands = 3 : i64, tpu.core_type = #tpu.core_type<tc>, window_params = [{}, {pipeline_mode = #tpu.pipeline_mode<synchronous>, transform_indices = @transform_1, window_bounds = array<i64: 8, 384>}, {pipeline_mode = #tpu.pipeline_mode<synchronous>, transform_indices = @transform_2, window_bounds = array<i64: 8, 384>}, {pipeline_mode = #tpu.pipeline_mode<synchronous>, transform_indices = @transform_3, window_bounds = array<i64: 8, 72>}, {pipeline_mode = #tpu.pipeline_mode<synchronous>, transform_indices = @transform_4, window_bounds = array<i64: 8, 1>}, {pipeline_mode = #tpu.pipeline_mode<synchronous>, transform_indices = @transform_5, window_bounds = array<i64: 8, 72>}, {pipeline_mode = #tpu.pipeline_mode<synchronous>, transform_indices = @transform_6, window_bounds = array<i64: 8, 1>}, {pipeline_mode = #tpu.pipeline_mode<synchronous>, transform_indices = @transform_7, window_bounds = array<i64: 8, 72>}, {pipeline_mode = #tpu.pipeline_mode<synchronous>, transform_indices = @transform_8, window_bounds = array<i64: 8, 1>}, {transform_indices = @transform_9, window_bounds = array<i64: 8, 128>}]} {
    %c512_i32 = arith.constant 512 : i32
    %0 = arith.muli %arg0, %c512_i32 : i32
    %c128_i32 = arith.constant 128 : i32
    %1 = arith.muli %arg1, %c128_i32 : i32
    %2 = arith.addi %0, %1 : i32
    %c0_i32 = arith.constant 0 : i32
    %c0_i32_0 = arith.constant 0 : i32
    %3 = tpu.memref_slice %arg2[%c0_i32_0, %2] : memref<8x1024xf32, #tpu.memory_space<any>> -> memref<8x384xf32, #tpu.memory_space<any>>
    %4 = tpu.memref_slice %arg14[%c0_i32] : memref<1x!tpu.dma_semaphore, #tpu.memory_space<semaphore_mem>> -> memref<1x!tpu.dma_semaphore, #tpu.memory_space<semaphore_mem>>
    %5 = tpu.memref_squeeze %4 : memref<1x!tpu.dma_semaphore, #tpu.memory_space<semaphore_mem>> -> memref<!tpu.dma_semaphore, #tpu.memory_space<semaphore_mem>>
    tpu.enqueue_dma source(%3 : memref<8x384xf32, #tpu.memory_space<any>>) target(%arg12 : memref<8x384xf32, #tpu.memory_space<vmem>>) target_semaphore(%5 : memref<!tpu.dma_semaphore, #tpu.memory_space<semaphore_mem>>)
    %c0_i32_1 = arith.constant 0 : i32
    %c0_i32_2 = arith.constant 0 : i32
    %6 = tpu.memref_slice %arg2[%c0_i32_2, %2] : memref<8x1024xf32, #tpu.memory_space<any>> -> memref<8x384xf32, #tpu.memory_space<any>>
    %7 = tpu.memref_slice %arg14[%c0_i32_1] : memref<1x!tpu.dma_semaphore, #tpu.memory_space<semaphore_mem>> -> memref<1x!tpu.dma_semaphore, #tpu.memory_space<semaphore_mem>>
    %8 = tpu.memref_squeeze %7 : memref<1x!tpu.dma_semaphore, #tpu.memory_space<semaphore_mem>> -> memref<!tpu.dma_semaphore, #tpu.memory_space<semaphore_mem>>
    tpu.wait_dma2 semaphore(%8 : memref<!tpu.dma_semaphore, #tpu.memory_space<semaphore_mem>>) src(%6 : memref<8x384xf32, #tpu.memory_space<any>>) dst(%arg12 : memref<8x384xf32, #tpu.memory_space<vmem>>)
    %c8_i32 = arith.constant 8 : i32
    %9 = arith.muli %arg1, %c8_i32 : i32
    %c5_i32 = arith.constant 5 : i32
    %10 = arith.subi %9, %c5_i32 : i32
    %c0 = arith.constant 0 : index
    %c0_3 = arith.constant 0 : index
    %11 = vector.load %arg3[%c0, %c0_3] : memref<8x384xi32, #tpu.memory_space<vmem>>, vector<8x384xi32>
    %12 = vector.broadcast %10 : i32 to vector<8x384xi32>
    %13 = arith.addi %11, %12 : vector<8x384xi32>
    %c0_i32_4 = arith.constant 0 : i32
    %14 = vector.broadcast %c0_i32_4 : i32 to vector<8x384xi32>
    %15 = arith.cmpi sge, %13, %14 : vector<8x384xi32>
    %c16_i32 = arith.constant 16 : i32
    %16 = vector.broadcast %c16_i32 : i32 to vector<8x384xi32>
    %17 = arith.cmpi slt, %13, %16 : vector<8x384xi32>
    %18 = arith.andi %15, %17 : vector<8x384xi1>
    %cst = arith.constant 1.000000e+00 : f32
    %cst_5 = arith.constant 0.000000e+00 : f32
    %19 = vector.broadcast %cst : f32 to vector<8x384xf32>
    %20 = vector.broadcast %cst_5 : f32 to vector<8x384xf32>
    %21 = arith.select %18, %19, %20 : vector<8x384xi1>, vector<8x384xf32>
    %c0_6 = arith.constant 0 : index
    %c0_7 = arith.constant 0 : index
    %22 = vector.load %arg4[%c0_6, %c0_7] : memref<8x384xi32, #tpu.memory_space<vmem>>, vector<8x384xi32>
    %c0_i32_8 = arith.constant 0 : i32
    %23 = vector.broadcast %c0_i32_8 : i32 to vector<8x384xi32>
    %24 = arith.cmpi sgt, %22, %23 : vector<8x384xi32>
    %cst_9 = arith.constant 1.000000e+00 : f32
    %cst_10 = arith.constant 0.000000e+00 : f32
    %25 = vector.broadcast %cst_9 : f32 to vector<8x384xf32>
    %26 = vector.broadcast %cst_10 : f32 to vector<8x384xf32>
    %27 = arith.select %24, %25, %26 : vector<8x384xi1>, vector<8x384xf32>
    %c15_i32 = arith.constant 15 : i32
    %28 = vector.broadcast %c15_i32 : i32 to vector<8x384xi32>
    %29 = arith.cmpi slt, %22, %28 : vector<8x384xi32>
    %cst_11 = arith.constant 1.000000e+00 : f32
    %cst_12 = arith.constant 0.000000e+00 : f32
    %30 = vector.broadcast %cst_11 : f32 to vector<8x384xf32>
    %31 = vector.broadcast %cst_12 : f32 to vector<8x384xf32>
    %32 = arith.select %29, %30, %31 : vector<8x384xi1>, vector<8x384xf32>
    %c0_13 = arith.constant 0 : index
    %c0_14 = arith.constant 0 : index
    %33 = vector.load %arg12[%c0_13, %c0_14] : memref<8x384xf32, #tpu.memory_space<vmem>>, vector<8x384xf32>
    %c0_15 = arith.constant 0 : index
    %c0_16 = arith.constant 0 : index
    %34 = vector.load %arg5[%c0_15, %c0_16] : memref<8x72xf32, #tpu.memory_space<vmem>>, vector<8x72xf32>
    %35 = arith.mulf %33, %21 : vector<8x384xf32>
    %c1_i32 = arith.constant 1 : i32
    %36 = tpu.dynamic_rotate %35 by %c1_i32 dim 1 : vector<8x384xf32>, i32 -> vector<8x384xf32>
    %37 = arith.mulf %36, %27 : vector<8x384xf32>
    %c383_i32 = arith.constant 383 : i32
    %38 = tpu.dynamic_rotate %35 by %c383_i32 dim 1 : vector<8x384xf32>, i32 -> vector<8x384xf32>
    %39 = arith.mulf %38, %32 : vector<8x384xf32>
    %c16_i32_17 = arith.constant 16 : i32
    %40 = tpu.dynamic_rotate %37 by %c16_i32_17 dim 1 : vector<8x384xf32>, i32 -> vector<8x384xf32>
    %c0_18 = arith.constant 0 : index
    %c0_19 = arith.constant 0 : index
    %41 = vector.load %arg13[%c0_18, %c0_19] : memref<72x384xf32, #tpu.memory_space<vmem>>, vector<8x384xf32>
    tpu.vector_store %arg13[%c0_18, %c0_19], %40 {strides = array<i32>} : memref<72x384xf32, #tpu.memory_space<vmem>>, vector<8x384xf32>,
    %c16_i32_20 = arith.constant 16 : i32
    %42 = tpu.dynamic_rotate %35 by %c16_i32_20 dim 1 : vector<8x384xf32>, i32 -> vector<8x384xf32>
    %c8 = arith.constant 8 : index
    %c0_21 = arith.constant 0 : index
    %43 = vector.load %arg13[%c8, %c0_21] : memref<72x384xf32, #tpu.memory_space<vmem>>, vector<8x384xf32>
    tpu.vector_store %arg13[%c8, %c0_21], %42 {strides = array<i32>} : memref<72x384xf32, #tpu.memory_space<vmem>>, vector<8x384xf32>,
    %c16_i32_22 = arith.constant 16 : i32
    %44 = tpu.dynamic_rotate %39 by %c16_i32_22 dim 1 : vector<8x384xf32>, i32 -> vector<8x384xf32>
    %c16 = arith.constant 16 : index
    %c0_23 = arith.constant 0 : index
    %45 = vector.load %arg13[%c16, %c0_23] : memref<72x384xf32, #tpu.memory_space<vmem>>, vector<8x384xf32>
    tpu.vector_store %arg13[%c16, %c0_23], %44 {strides = array<i32>} : memref<72x384xf32, #tpu.memory_space<vmem>>, vector<8x384xf32>,
    %c24 = arith.constant 24 : index
    %c0_24 = arith.constant 0 : index
    %46 = vector.load %arg13[%c24, %c0_24] : memref<72x384xf32, #tpu.memory_space<vmem>>, vector<8x384xf32>
    tpu.vector_store %arg13[%c24, %c0_24], %37 {strides = array<i32>} : memref<72x384xf32, #tpu.memory_space<vmem>>, vector<8x384xf32>,
    %c32 = arith.constant 32 : index
    %c0_25 = arith.constant 0 : index
    %47 = vector.load %arg13[%c32, %c0_25] : memref<72x384xf32, #tpu.memory_space<vmem>>, vector<8x384xf32>
    tpu.vector_store %arg13[%c32, %c0_25], %35 {strides = array<i32>} : memref<72x384xf32, #tpu.memory_space<vmem>>, vector<8x384xf32>,
    %c40 = arith.constant 40 : index
    %c0_26 = arith.constant 0 : index
    %48 = vector.load %arg13[%c40, %c0_26] : memref<72x384xf32, #tpu.memory_space<vmem>>, vector<8x384xf32>
    tpu.vector_store %arg13[%c40, %c0_26], %39 {strides = array<i32>} : memref<72x384xf32, #tpu.memory_space<vmem>>, vector<8x384xf32>,
    %c368_i32 = arith.constant 368 : i32
    %49 = tpu.dynamic_rotate %37 by %c368_i32 dim 1 : vector<8x384xf32>, i32 -> vector<8x384xf32>
    %c48 = arith.constant 48 : index
    %c0_27 = arith.constant 0 : index
    %50 = vector.load %arg13[%c48, %c0_27] : memref<72x384xf32, #tpu.memory_space<vmem>>, vector<8x384xf32>
    tpu.vector_store %arg13[%c48, %c0_27], %49 {strides = array<i32>} : memref<72x384xf32, #tpu.memory_space<vmem>>, vector<8x384xf32>,
    %c368_i32_28 = arith.constant 368 : i32
    %51 = tpu.dynamic_rotate %35 by %c368_i32_28 dim 1 : vector<8x384xf32>, i32 -> vector<8x384xf32>
    %c56 = arith.constant 56 : index
    %c0_29 = arith.constant 0 : index
    %52 = vector.load %arg13[%c56, %c0_29] : memref<72x384xf32, #tpu.memory_space<vmem>>, vector<8x384xf32>
    tpu.vector_store %arg13[%c56, %c0_29], %51 {strides = array<i32>} : memref<72x384xf32, #tpu.memory_space<vmem>>, vector<8x384xf32>,
    %c368_i32_30 = arith.constant 368 : i32
    %53 = tpu.dynamic_rotate %39 by %c368_i32_30 dim 1 : vector<8x384xf32>, i32 -> vector<8x384xf32>
    %c64 = arith.constant 64 : index
    %c0_31 = arith.constant 0 : index
    %54 = vector.load %arg13[%c64, %c0_31] : memref<72x384xf32, #tpu.memory_space<vmem>>, vector<8x384xf32>
    tpu.vector_store %arg13[%c64, %c0_31], %53 {strides = array<i32>} : memref<72x384xf32, #tpu.memory_space<vmem>>, vector<8x384xf32>,
    %c0_32 = arith.constant 0 : index
    %c0_33 = arith.constant 0 : index
    %55 = vector.load %arg13[%c0_32, %c0_33] : memref<72x384xf32, #tpu.memory_space<vmem>>, vector<72x384xf32>
    %cst_34 = arith.constant dense<0.000000e+00> : vector<8x384xf32>
    %56 = tpu.matmul %34, %55, %cst_34 {dimension_numbers = #tpu.dot_dimension_numbers<[1], [0], [0], [1], [0, 0, 1, 1], [], []>} : vector<8x72xf32>, vector<72x384xf32>, vector<8x384xf32> -> vector<8x384xf32>
    %c0_35 = arith.constant 0 : index
    %c0_36 = arith.constant 0 : index
    %57 = vector.load %arg6[%c0_35, %c0_36] : memref<8x1xf32, #tpu.memory_space<vmem>>, vector<8x1xf32>
    %58 = vector.broadcast %57 : vector<8x1xf32> to vector<8x384xf32>
    %59 = arith.addf %56, %58 : vector<8x384xf32>
    %cst_37 = arith.constant 0.000000e+00 : f32
    %60 = vector.broadcast %cst_37 : f32 to vector<8x384xf32>
    %61 = arith.maximumf %59, %60 : vector<8x384xf32>
    %c0_38 = arith.constant 0 : index
    %c0_39 = arith.constant 0 : index
    %62 = vector.load %arg7[%c0_38, %c0_39] : memref<8x72xf32, #tpu.memory_space<vmem>>, vector<8x72xf32>
    %c0_40 = arith.constant 0 : index
    %c0_41 = arith.constant 0 : index
    %63 = vector.load %arg8[%c0_40, %c0_41] : memref<8x1xf32, #tpu.memory_space<vmem>>, vector<8x1xf32>
    %64 = arith.mulf %61, %21 : vector<8x384xf32>
    %c1_i32_42 = arith.constant 1 : i32
    %65 = tpu.dynamic_rotate %64 by %c1_i32_42 dim 1 : vector<8x384xf32>, i32 -> vector<8x384xf32>
    %66 = arith.mulf %65, %27 : vector<8x384xf32>
    %c383_i32_43 = arith.constant 383 : i32
    %67 = tpu.dynamic_rotate %64 by %c383_i32_43 dim 1 : vector<8x384xf32>, i32 -> vector<8x384xf32>
    %68 = arith.mulf %67, %32 : vector<8x384xf32>
    %c16_i32_44 = arith.constant 16 : i32
    %69 = tpu.dynamic_rotate %66 by %c16_i32_44 dim 1 : vector<8x384xf32>, i32 -> vector<8x384xf32>
    %c0_45 = arith.constant 0 : index
    %c0_46 = arith.constant 0 : index
    %70 = vector.load %arg13[%c0_45, %c0_46] : memref<72x384xf32, #tpu.memory_space<vmem>>, vector<8x384xf32>
    tpu.vector_store %arg13[%c0_45, %c0_46], %69 {strides = array<i32>} : memref<72x384xf32, #tpu.memory_space<vmem>>, vector<8x384xf32>,
    %c16_i32_47 = arith.constant 16 : i32
    %71 = tpu.dynamic_rotate %64 by %c16_i32_47 dim 1 : vector<8x384xf32>, i32 -> vector<8x384xf32>
    %c8_48 = arith.constant 8 : index
    %c0_49 = arith.constant 0 : index
    %72 = vector.load %arg13[%c8_48, %c0_49] : memref<72x384xf32, #tpu.memory_space<vmem>>, vector<8x384xf32>
    tpu.vector_store %arg13[%c8_48, %c0_49], %71 {strides = array<i32>} : memref<72x384xf32, #tpu.memory_space<vmem>>, vector<8x384xf32>,
    %c16_i32_50 = arith.constant 16 : i32
    %73 = tpu.dynamic_rotate %68 by %c16_i32_50 dim 1 : vector<8x384xf32>, i32 -> vector<8x384xf32>
    %c16_51 = arith.constant 16 : index
    %c0_52 = arith.constant 0 : index
    %74 = vector.load %arg13[%c16_51, %c0_52] : memref<72x384xf32, #tpu.memory_space<vmem>>, vector<8x384xf32>
    tpu.vector_store %arg13[%c16_51, %c0_52], %73 {strides = array<i32>} : memref<72x384xf32, #tpu.memory_space<vmem>>, vector<8x384xf32>,
    %c24_53 = arith.constant 24 : index
    %c0_54 = arith.constant 0 : index
    %75 = vector.load %arg13[%c24_53, %c0_54] : memref<72x384xf32, #tpu.memory_space<vmem>>, vector<8x384xf32>
    tpu.vector_store %arg13[%c24_53, %c0_54], %66 {strides = array<i32>} : memref<72x384xf32, #tpu.memory_space<vmem>>, vector<8x384xf32>,
    %c32_55 = arith.constant 32 : index
    %c0_56 = arith.constant 0 : index
    %76 = vector.load %arg13[%c32_55, %c0_56] : memref<72x384xf32, #tpu.memory_space<vmem>>, vector<8x384xf32>
    tpu.vector_store %arg13[%c32_55, %c0_56], %64 {strides = array<i32>} : memref<72x384xf32, #tpu.memory_space<vmem>>, vector<8x384xf32>,
    %c40_57 = arith.constant 40 : index
    %c0_58 = arith.constant 0 : index
    %77 = vector.load %arg13[%c40_57, %c0_58] : memref<72x384xf32, #tpu.memory_space<vmem>>, vector<8x384xf32>
    tpu.vector_store %arg13[%c40_57, %c0_58], %68 {strides = array<i32>} : memref<72x384xf32, #tpu.memory_space<vmem>>, vector<8x384xf32>,
    %c368_i32_59 = arith.constant 368 : i32
    %78 = tpu.dynamic_rotate %66 by %c368_i32_59 dim 1 : vector<8x384xf32>, i32 -> vector<8x384xf32>
    %c48_60 = arith.constant 48 : index
    %c0_61 = arith.constant 0 : index
    %79 = vector.load %arg13[%c48_60, %c0_61] : memref<72x384xf32, #tpu.memory_space<vmem>>, vector<8x384xf32>
    tpu.vector_store %arg13[%c48_60, %c0_61], %78 {strides = array<i32>} : memref<72x384xf32, #tpu.memory_space<vmem>>, vector<8x384xf32>,
    %c368_i32_62 = arith.constant 368 : i32
    %80 = tpu.dynamic_rotate %64 by %c368_i32_62 dim 1 : vector<8x384xf32>, i32 -> vector<8x384xf32>
    %c56_63 = arith.constant 56 : index
    %c0_64 = arith.constant 0 : index
    %81 = vector.load %arg13[%c56_63, %c0_64] : memref<72x384xf32, #tpu.memory_space<vmem>>, vector<8x384xf32>
    tpu.vector_store %arg13[%c56_63, %c0_64], %80 {strides = array<i32>} : memref<72x384xf32, #tpu.memory_space<vmem>>, vector<8x384xf32>,
    %c368_i32_65 = arith.constant 368 : i32
    %82 = tpu.dynamic_rotate %68 by %c368_i32_65 dim 1 : vector<8x384xf32>, i32 -> vector<8x384xf32>
    %c64_66 = arith.constant 64 : index
    %c0_67 = arith.constant 0 : index
    %83 = vector.load %arg13[%c64_66, %c0_67] : memref<72x384xf32, #tpu.memory_space<vmem>>, vector<8x384xf32>
    tpu.vector_store %arg13[%c64_66, %c0_67], %82 {strides = array<i32>} : memref<72x384xf32, #tpu.memory_space<vmem>>, vector<8x384xf32>,
    %c0_68 = arith.constant 0 : index
    %c0_69 = arith.constant 0 : index
    %84 = vector.load %arg13[%c0_68, %c0_69] : memref<72x384xf32, #tpu.memory_space<vmem>>, vector<72x384xf32>
    %cst_70 = arith.constant dense<0.000000e+00> : vector<8x384xf32>
    %85 = tpu.matmul %62, %84, %cst_70 {dimension_numbers = #tpu.dot_dimension_numbers<[1], [0], [0], [1], [0, 0, 1, 1], [], []>} : vector<8x72xf32>, vector<72x384xf32>, vector<8x384xf32> -> vector<8x384xf32>
    %86 = vector.broadcast %63 : vector<8x1xf32> to vector<8x384xf32>
    %87 = arith.addf %85, %86 : vector<8x384xf32>
    %cst_71 = arith.constant 0.000000e+00 : f32
    %88 = vector.broadcast %cst_71 : f32 to vector<8x384xf32>
    %89 = arith.maximumf %87, %88 : vector<8x384xf32>
    %90 = arith.addf %61, %89 : vector<8x384xf32>
    %91 = arith.mulf %90, %21 : vector<8x384xf32>
    %c1_i32_72 = arith.constant 1 : i32
    %92 = tpu.dynamic_rotate %91 by %c1_i32_72 dim 1 : vector<8x384xf32>, i32 -> vector<8x384xf32>
    %93 = arith.mulf %92, %27 : vector<8x384xf32>
    %c383_i32_73 = arith.constant 383 : i32
    %94 = tpu.dynamic_rotate %91 by %c383_i32_73 dim 1 : vector<8x384xf32>, i32 -> vector<8x384xf32>
    %95 = arith.mulf %94, %32 : vector<8x384xf32>
    %c16_i32_74 = arith.constant 16 : i32
    %96 = tpu.dynamic_rotate %93 by %c16_i32_74 dim 1 : vector<8x384xf32>, i32 -> vector<8x384xf32>
    %c0_75 = arith.constant 0 : index
    %c0_76 = arith.constant 0 : index
    %97 = vector.load %arg13[%c0_75, %c0_76] : memref<72x384xf32, #tpu.memory_space<vmem>>, vector<8x384xf32>
    tpu.vector_store %arg13[%c0_75, %c0_76], %96 {strides = array<i32>} : memref<72x384xf32, #tpu.memory_space<vmem>>, vector<8x384xf32>,
    %c16_i32_77 = arith.constant 16 : i32
    %98 = tpu.dynamic_rotate %91 by %c16_i32_77 dim 1 : vector<8x384xf32>, i32 -> vector<8x384xf32>
    %c8_78 = arith.constant 8 : index
    %c0_79 = arith.constant 0 : index
    %99 = vector.load %arg13[%c8_78, %c0_79] : memref<72x384xf32, #tpu.memory_space<vmem>>, vector<8x384xf32>
    tpu.vector_store %arg13[%c8_78, %c0_79], %98 {strides = array<i32>} : memref<72x384xf32, #tpu.memory_space<vmem>>, vector<8x384xf32>,
    %c16_i32_80 = arith.constant 16 : i32
    %100 = tpu.dynamic_rotate %95 by %c16_i32_80 dim 1 : vector<8x384xf32>, i32 -> vector<8x384xf32>
    %c16_81 = arith.constant 16 : index
    %c0_82 = arith.constant 0 : index
    %101 = vector.load %arg13[%c16_81, %c0_82] : memref<72x384xf32, #tpu.memory_space<vmem>>, vector<8x384xf32>
    tpu.vector_store %arg13[%c16_81, %c0_82], %100 {strides = array<i32>} : memref<72x384xf32, #tpu.memory_space<vmem>>, vector<8x384xf32>,
    %c24_83 = arith.constant 24 : index
    %c0_84 = arith.constant 0 : index
    %102 = vector.load %arg13[%c24_83, %c0_84] : memref<72x384xf32, #tpu.memory_space<vmem>>, vector<8x384xf32>
    tpu.vector_store %arg13[%c24_83, %c0_84], %93 {strides = array<i32>} : memref<72x384xf32, #tpu.memory_space<vmem>>, vector<8x384xf32>,
    %c32_85 = arith.constant 32 : index
    %c0_86 = arith.constant 0 : index
    %103 = vector.load %arg13[%c32_85, %c0_86] : memref<72x384xf32, #tpu.memory_space<vmem>>, vector<8x384xf32>
    tpu.vector_store %arg13[%c32_85, %c0_86], %91 {strides = array<i32>} : memref<72x384xf32, #tpu.memory_space<vmem>>, vector<8x384xf32>,
    %c40_87 = arith.constant 40 : index
    %c0_88 = arith.constant 0 : index
    %104 = vector.load %arg13[%c40_87, %c0_88] : memref<72x384xf32, #tpu.memory_space<vmem>>, vector<8x384xf32>
    tpu.vector_store %arg13[%c40_87, %c0_88], %95 {strides = array<i32>} : memref<72x384xf32, #tpu.memory_space<vmem>>, vector<8x384xf32>,
    %c368_i32_89 = arith.constant 368 : i32
    %105 = tpu.dynamic_rotate %93 by %c368_i32_89 dim 1 : vector<8x384xf32>, i32 -> vector<8x384xf32>
    %c48_90 = arith.constant 48 : index
    %c0_91 = arith.constant 0 : index
    %106 = vector.load %arg13[%c48_90, %c0_91] : memref<72x384xf32, #tpu.memory_space<vmem>>, vector<8x384xf32>
    tpu.vector_store %arg13[%c48_90, %c0_91], %105 {strides = array<i32>} : memref<72x384xf32, #tpu.memory_space<vmem>>, vector<8x384xf32>,
    %c368_i32_92 = arith.constant 368 : i32
    %107 = tpu.dynamic_rotate %91 by %c368_i32_92 dim 1 : vector<8x384xf32>, i32 -> vector<8x384xf32>
    %c56_93 = arith.constant 56 : index
    %c0_94 = arith.constant 0 : index
    %108 = vector.load %arg13[%c56_93, %c0_94] : memref<72x384xf32, #tpu.memory_space<vmem>>, vector<8x384xf32>
    tpu.vector_store %arg13[%c56_93, %c0_94], %107 {strides = array<i32>} : memref<72x384xf32, #tpu.memory_space<vmem>>, vector<8x384xf32>,
    %c368_i32_95 = arith.constant 368 : i32
    %109 = tpu.dynamic_rotate %95 by %c368_i32_95 dim 1 : vector<8x384xf32>, i32 -> vector<8x384xf32>
    %c64_96 = arith.constant 64 : index
    %c0_97 = arith.constant 0 : index
    %110 = vector.load %arg13[%c64_96, %c0_97] : memref<72x384xf32, #tpu.memory_space<vmem>>, vector<8x384xf32>
    tpu.vector_store %arg13[%c64_96, %c0_97], %109 {strides = array<i32>} : memref<72x384xf32, #tpu.memory_space<vmem>>, vector<8x384xf32>,
    %c0_98 = arith.constant 0 : index
    %c0_99 = arith.constant 0 : index
    %111 = vector.load %arg13[%c0_98, %c0_99] : memref<72x384xf32, #tpu.memory_space<vmem>>, vector<72x384xf32>
    %cst_100 = arith.constant dense<0.000000e+00> : vector<8x384xf32>
    %112 = tpu.matmul %62, %111, %cst_100 {dimension_numbers = #tpu.dot_dimension_numbers<[1], [0], [0], [1], [0, 0, 1, 1], [], []>} : vector<8x72xf32>, vector<72x384xf32>, vector<8x384xf32> -> vector<8x384xf32>
    %113 = vector.broadcast %63 : vector<8x1xf32> to vector<8x384xf32>
    %114 = arith.addf %112, %113 : vector<8x384xf32>
    %cst_101 = arith.constant 0.000000e+00 : f32
    %115 = vector.broadcast %cst_101 : f32 to vector<8x384xf32>
    %116 = arith.maximumf %114, %115 : vector<8x384xf32>
    %117 = arith.addf %90, %116 : vector<8x384xf32>
    %118 = arith.mulf %117, %21 : vector<8x384xf32>
    %c1_i32_102 = arith.constant 1 : i32
    %119 = tpu.dynamic_rotate %118 by %c1_i32_102 dim 1 : vector<8x384xf32>, i32 -> vector<8x384xf32>
    %120 = arith.mulf %119, %27 : vector<8x384xf32>
    %c383_i32_103 = arith.constant 383 : i32
    %121 = tpu.dynamic_rotate %118 by %c383_i32_103 dim 1 : vector<8x384xf32>, i32 -> vector<8x384xf32>
    %122 = arith.mulf %121, %32 : vector<8x384xf32>
    %c16_i32_104 = arith.constant 16 : i32
    %123 = tpu.dynamic_rotate %120 by %c16_i32_104 dim 1 : vector<8x384xf32>, i32 -> vector<8x384xf32>
    %c0_105 = arith.constant 0 : index
    %c0_106 = arith.constant 0 : index
    %124 = vector.load %arg13[%c0_105, %c0_106] : memref<72x384xf32, #tpu.memory_space<vmem>>, vector<8x384xf32>
    tpu.vector_store %arg13[%c0_105, %c0_106], %123 {strides = array<i32>} : memref<72x384xf32, #tpu.memory_space<vmem>>, vector<8x384xf32>,
    %c16_i32_107 = arith.constant 16 : i32
    %125 = tpu.dynamic_rotate %118 by %c16_i32_107 dim 1 : vector<8x384xf32>, i32 -> vector<8x384xf32>
    %c8_108 = arith.constant 8 : index
    %c0_109 = arith.constant 0 : index
    %126 = vector.load %arg13[%c8_108, %c0_109] : memref<72x384xf32, #tpu.memory_space<vmem>>, vector<8x384xf32>
    tpu.vector_store %arg13[%c8_108, %c0_109], %125 {strides = array<i32>} : memref<72x384xf32, #tpu.memory_space<vmem>>, vector<8x384xf32>,
    %c16_i32_110 = arith.constant 16 : i32
    %127 = tpu.dynamic_rotate %122 by %c16_i32_110 dim 1 : vector<8x384xf32>, i32 -> vector<8x384xf32>
    %c16_111 = arith.constant 16 : index
    %c0_112 = arith.constant 0 : index
    %128 = vector.load %arg13[%c16_111, %c0_112] : memref<72x384xf32, #tpu.memory_space<vmem>>, vector<8x384xf32>
    tpu.vector_store %arg13[%c16_111, %c0_112], %127 {strides = array<i32>} : memref<72x384xf32, #tpu.memory_space<vmem>>, vector<8x384xf32>,
    %c24_113 = arith.constant 24 : index
    %c0_114 = arith.constant 0 : index
    %129 = vector.load %arg13[%c24_113, %c0_114] : memref<72x384xf32, #tpu.memory_space<vmem>>, vector<8x384xf32>
    tpu.vector_store %arg13[%c24_113, %c0_114], %120 {strides = array<i32>} : memref<72x384xf32, #tpu.memory_space<vmem>>, vector<8x384xf32>,
    %c32_115 = arith.constant 32 : index
    %c0_116 = arith.constant 0 : index
    %130 = vector.load %arg13[%c32_115, %c0_116] : memref<72x384xf32, #tpu.memory_space<vmem>>, vector<8x384xf32>
    tpu.vector_store %arg13[%c32_115, %c0_116], %118 {strides = array<i32>} : memref<72x384xf32, #tpu.memory_space<vmem>>, vector<8x384xf32>,
    %c40_117 = arith.constant 40 : index
    %c0_118 = arith.constant 0 : index
    %131 = vector.load %arg13[%c40_117, %c0_118] : memref<72x384xf32, #tpu.memory_space<vmem>>, vector<8x384xf32>
    tpu.vector_store %arg13[%c40_117, %c0_118], %122 {strides = array<i32>} : memref<72x384xf32, #tpu.memory_space<vmem>>, vector<8x384xf32>,
    %c368_i32_119 = arith.constant 368 : i32
    %132 = tpu.dynamic_rotate %120 by %c368_i32_119 dim 1 : vector<8x384xf32>, i32 -> vector<8x384xf32>
    %c48_120 = arith.constant 48 : index
    %c0_121 = arith.constant 0 : index
    %133 = vector.load %arg13[%c48_120, %c0_121] : memref<72x384xf32, #tpu.memory_space<vmem>>, vector<8x384xf32>
    tpu.vector_store %arg13[%c48_120, %c0_121], %132 {strides = array<i32>} : memref<72x384xf32, #tpu.memory_space<vmem>>, vector<8x384xf32>,
    %c368_i32_122 = arith.constant 368 : i32
    %134 = tpu.dynamic_rotate %118 by %c368_i32_122 dim 1 : vector<8x384xf32>, i32 -> vector<8x384xf32>
    %c56_123 = arith.constant 56 : index
    %c0_124 = arith.constant 0 : index
    %135 = vector.load %arg13[%c56_123, %c0_124] : memref<72x384xf32, #tpu.memory_space<vmem>>, vector<8x384xf32>
    tpu.vector_store %arg13[%c56_123, %c0_124], %134 {strides = array<i32>} : memref<72x384xf32, #tpu.memory_space<vmem>>, vector<8x384xf32>,
    %c368_i32_125 = arith.constant 368 : i32
    %136 = tpu.dynamic_rotate %122 by %c368_i32_125 dim 1 : vector<8x384xf32>, i32 -> vector<8x384xf32>
    %c64_126 = arith.constant 64 : index
    %c0_127 = arith.constant 0 : index
    %137 = vector.load %arg13[%c64_126, %c0_127] : memref<72x384xf32, #tpu.memory_space<vmem>>, vector<8x384xf32>
    tpu.vector_store %arg13[%c64_126, %c0_127], %136 {strides = array<i32>} : memref<72x384xf32, #tpu.memory_space<vmem>>, vector<8x384xf32>,
    %c0_128 = arith.constant 0 : index
    %c0_129 = arith.constant 0 : index
    %138 = vector.load %arg13[%c0_128, %c0_129] : memref<72x384xf32, #tpu.memory_space<vmem>>, vector<72x384xf32>
    %cst_130 = arith.constant dense<0.000000e+00> : vector<8x384xf32>
    %139 = tpu.matmul %62, %138, %cst_130 {dimension_numbers = #tpu.dot_dimension_numbers<[1], [0], [0], [1], [0, 0, 1, 1], [], []>} : vector<8x72xf32>, vector<72x384xf32>, vector<8x384xf32> -> vector<8x384xf32>
    %140 = vector.broadcast %63 : vector<8x1xf32> to vector<8x384xf32>
    %141 = arith.addf %139, %140 : vector<8x384xf32>
    %cst_131 = arith.constant 0.000000e+00 : f32
    %142 = vector.broadcast %cst_131 : f32 to vector<8x384xf32>
    %143 = arith.maximumf %141, %142 : vector<8x384xf32>
    %144 = arith.addf %117, %143 : vector<8x384xf32>
    %c0_132 = arith.constant 0 : index
    %c0_133 = arith.constant 0 : index
    %145 = vector.load %arg9[%c0_132, %c0_133] : memref<8x72xf32, #tpu.memory_space<vmem>>, vector<8x72xf32>
    %146 = arith.mulf %144, %21 : vector<8x384xf32>
    %c1_i32_134 = arith.constant 1 : i32
    %147 = tpu.dynamic_rotate %146 by %c1_i32_134 dim 1 : vector<8x384xf32>, i32 -> vector<8x384xf32>
    %148 = arith.mulf %147, %27 : vector<8x384xf32>
    %c383_i32_135 = arith.constant 383 : i32
    %149 = tpu.dynamic_rotate %146 by %c383_i32_135 dim 1 : vector<8x384xf32>, i32 -> vector<8x384xf32>
    %150 = arith.mulf %149, %32 : vector<8x384xf32>
    %c16_i32_136 = arith.constant 16 : i32
    %151 = tpu.dynamic_rotate %148 by %c16_i32_136 dim 1 : vector<8x384xf32>, i32 -> vector<8x384xf32>
    %c0_137 = arith.constant 0 : index
    %c0_138 = arith.constant 0 : index
    %152 = vector.load %arg13[%c0_137, %c0_138] : memref<72x384xf32, #tpu.memory_space<vmem>>, vector<8x384xf32>
    tpu.vector_store %arg13[%c0_137, %c0_138], %151 {strides = array<i32>} : memref<72x384xf32, #tpu.memory_space<vmem>>, vector<8x384xf32>,
    %c16_i32_139 = arith.constant 16 : i32
    %153 = tpu.dynamic_rotate %146 by %c16_i32_139 dim 1 : vector<8x384xf32>, i32 -> vector<8x384xf32>
    %c8_140 = arith.constant 8 : index
    %c0_141 = arith.constant 0 : index
    %154 = vector.load %arg13[%c8_140, %c0_141] : memref<72x384xf32, #tpu.memory_space<vmem>>, vector<8x384xf32>
    tpu.vector_store %arg13[%c8_140, %c0_141], %153 {strides = array<i32>} : memref<72x384xf32, #tpu.memory_space<vmem>>, vector<8x384xf32>,
    %c16_i32_142 = arith.constant 16 : i32
    %155 = tpu.dynamic_rotate %150 by %c16_i32_142 dim 1 : vector<8x384xf32>, i32 -> vector<8x384xf32>
    %c16_143 = arith.constant 16 : index
    %c0_144 = arith.constant 0 : index
    %156 = vector.load %arg13[%c16_143, %c0_144] : memref<72x384xf32, #tpu.memory_space<vmem>>, vector<8x384xf32>
    tpu.vector_store %arg13[%c16_143, %c0_144], %155 {strides = array<i32>} : memref<72x384xf32, #tpu.memory_space<vmem>>, vector<8x384xf32>,
    %c24_145 = arith.constant 24 : index
    %c0_146 = arith.constant 0 : index
    %157 = vector.load %arg13[%c24_145, %c0_146] : memref<72x384xf32, #tpu.memory_space<vmem>>, vector<8x384xf32>
    tpu.vector_store %arg13[%c24_145, %c0_146], %148 {strides = array<i32>} : memref<72x384xf32, #tpu.memory_space<vmem>>, vector<8x384xf32>,
    %c32_147 = arith.constant 32 : index
    %c0_148 = arith.constant 0 : index
    %158 = vector.load %arg13[%c32_147, %c0_148] : memref<72x384xf32, #tpu.memory_space<vmem>>, vector<8x384xf32>
    tpu.vector_store %arg13[%c32_147, %c0_148], %146 {strides = array<i32>} : memref<72x384xf32, #tpu.memory_space<vmem>>, vector<8x384xf32>,
    %c40_149 = arith.constant 40 : index
    %c0_150 = arith.constant 0 : index
    %159 = vector.load %arg13[%c40_149, %c0_150] : memref<72x384xf32, #tpu.memory_space<vmem>>, vector<8x384xf32>
    tpu.vector_store %arg13[%c40_149, %c0_150], %150 {strides = array<i32>} : memref<72x384xf32, #tpu.memory_space<vmem>>, vector<8x384xf32>,
    %c368_i32_151 = arith.constant 368 : i32
    %160 = tpu.dynamic_rotate %148 by %c368_i32_151 dim 1 : vector<8x384xf32>, i32 -> vector<8x384xf32>
    %c48_152 = arith.constant 48 : index
    %c0_153 = arith.constant 0 : index
    %161 = vector.load %arg13[%c48_152, %c0_153] : memref<72x384xf32, #tpu.memory_space<vmem>>, vector<8x384xf32>
    tpu.vector_store %arg13[%c48_152, %c0_153], %160 {strides = array<i32>} : memref<72x384xf32, #tpu.memory_space<vmem>>, vector<8x384xf32>,
    %c368_i32_154 = arith.constant 368 : i32
    %162 = tpu.dynamic_rotate %146 by %c368_i32_154 dim 1 : vector<8x384xf32>, i32 -> vector<8x384xf32>
    %c56_155 = arith.constant 56 : index
    %c0_156 = arith.constant 0 : index
    %163 = vector.load %arg13[%c56_155, %c0_156] : memref<72x384xf32, #tpu.memory_space<vmem>>, vector<8x384xf32>
    tpu.vector_store %arg13[%c56_155, %c0_156], %162 {strides = array<i32>} : memref<72x384xf32, #tpu.memory_space<vmem>>, vector<8x384xf32>,
    %c368_i32_157 = arith.constant 368 : i32
    %164 = tpu.dynamic_rotate %150 by %c368_i32_157 dim 1 : vector<8x384xf32>, i32 -> vector<8x384xf32>
    %c64_158 = arith.constant 64 : index
    %c0_159 = arith.constant 0 : index
    %165 = vector.load %arg13[%c64_158, %c0_159] : memref<72x384xf32, #tpu.memory_space<vmem>>, vector<8x384xf32>
    tpu.vector_store %arg13[%c64_158, %c0_159], %164 {strides = array<i32>} : memref<72x384xf32, #tpu.memory_space<vmem>>, vector<8x384xf32>,
    %c0_160 = arith.constant 0 : index
    %c0_161 = arith.constant 0 : index
    %166 = vector.load %arg13[%c0_160, %c0_161] : memref<72x384xf32, #tpu.memory_space<vmem>>, vector<72x384xf32>
    %cst_162 = arith.constant dense<0.000000e+00> : vector<8x384xf32>
    %167 = tpu.matmul %145, %166, %cst_162 {dimension_numbers = #tpu.dot_dimension_numbers<[1], [0], [0], [1], [0, 0, 1, 1], [], []>} : vector<8x72xf32>, vector<72x384xf32>, vector<8x384xf32> -> vector<8x384xf32>
    %c0_163 = arith.constant 0 : index
    %c0_164 = arith.constant 0 : index
    %168 = vector.load %arg10[%c0_163, %c0_164] : memref<8x1xf32, #tpu.memory_space<vmem>>, vector<8x1xf32>
    %169 = vector.broadcast %168 : vector<8x1xf32> to vector<8x384xf32>
    %170 = arith.addf %167, %169 : vector<8x384xf32>
    %171 = vector.extract_strided_slice %170 {offsets = [0, 80], sizes = [8, 128], strides = [1, 1]} : vector<8x384xf32> to vector<8x128xf32>
    %cst_165 = arith.constant 5.000000e-01 : f32
    %172 = vector.broadcast %cst_165 : f32 to vector<8x128xf32>
    %173 = arith.mulf %172, %171 : vector<8x128xf32>
    %174 = math.tanh %173 : vector<8x128xf32>
    %cst_166 = arith.constant 5.000000e-01 : f32
    %175 = vector.broadcast %cst_166 : f32 to vector<8x128xf32>
    %176 = arith.mulf %175, %174 : vector<8x128xf32>
    %cst_167 = arith.constant 5.000000e-01 : f32
    %177 = vector.broadcast %cst_167 : f32 to vector<8x128xf32>
    %178 = arith.addf %176, %177 : vector<8x128xf32>
    %c0_168 = arith.constant 0 : index
    %c80 = arith.constant 80 : index
    %179 = vector.load %arg12[%c0_168, %c80] : memref<8x384xf32, #tpu.memory_space<vmem>>, vector<8x128xf32>
    %180 = arith.addf %178, %179 : vector<8x128xf32>
    %cst_169 = arith.constant 9.99999974E-5 : f32
    %cst_170 = arith.constant 1.000000e+00 : f32
    %181 = vector.broadcast %cst_169 : f32 to vector<8x128xf32>
    %182 = arith.maximumf %181, %180 : vector<8x128xf32>
    %183 = vector.broadcast %cst_170 : f32 to vector<8x128xf32>
    %184 = arith.minimumf %183, %182 : vector<8x128xf32>
    %c0_171 = arith.constant 0 : index
    %c0_172 = arith.constant 0 : index
    %185 = vector.load %arg11[%c0_171, %c0_172] : memref<8x128xf32, #tpu.memory_space<vmem>>, vector<8x128xf32>
    tpu.vector_store %arg11[%c0_171, %c0_172], %184 {strides = array<i32>} : memref<8x128xf32, #tpu.memory_space<vmem>>, vector<8x128xf32>,
    return
  }
  func.func @transform_1(%arg0: i32, %arg1: i32) -> (i32, i32) {
    %c0_i32 = arith.constant 0 : i32
    %c0_i32_0 = arith.constant 0 : i32
    %c0_i32_1 = arith.constant 0 : i32
    return %c0_i32, %c0_i32_0 : i32, i32
  }
  func.func @transform_2(%arg0: i32, %arg1: i32) -> (i32, i32) {
    %c0_i32 = arith.constant 0 : i32
    %c0_i32_0 = arith.constant 0 : i32
    %c0_i32_1 = arith.constant 0 : i32
    return %c0_i32, %c0_i32_0 : i32, i32
  }
  func.func @transform_3(%arg0: i32, %arg1: i32) -> (i32, i32) {
    %c0_i32 = arith.constant 0 : i32
    %c0_i32_0 = arith.constant 0 : i32
    %c0_i32_1 = arith.constant 0 : i32
    return %c0_i32, %c0_i32_0 : i32, i32
  }
  func.func @transform_4(%arg0: i32, %arg1: i32) -> (i32, i32) {
    %c0_i32 = arith.constant 0 : i32
    %c0_i32_0 = arith.constant 0 : i32
    %c0_i32_1 = arith.constant 0 : i32
    return %c0_i32, %c0_i32_0 : i32, i32
  }
  func.func @transform_5(%arg0: i32, %arg1: i32) -> (i32, i32) {
    %c0_i32 = arith.constant 0 : i32
    %c0_i32_0 = arith.constant 0 : i32
    %c0_i32_1 = arith.constant 0 : i32
    return %c0_i32, %c0_i32_0 : i32, i32
  }
  func.func @transform_6(%arg0: i32, %arg1: i32) -> (i32, i32) {
    %c0_i32 = arith.constant 0 : i32
    %c0_i32_0 = arith.constant 0 : i32
    %c0_i32_1 = arith.constant 0 : i32
    return %c0_i32, %c0_i32_0 : i32, i32
  }
  func.func @transform_7(%arg0: i32, %arg1: i32) -> (i32, i32) {
    %c0_i32 = arith.constant 0 : i32
    %c0_i32_0 = arith.constant 0 : i32
    %c0_i32_1 = arith.constant 0 : i32
    return %c0_i32, %c0_i32_0 : i32, i32
  }
  func.func @transform_8(%arg0: i32, %arg1: i32) -> (i32, i32) {
    %c0_i32 = arith.constant 0 : i32
    %c0_i32_0 = arith.constant 0 : i32
    %c0_i32_1 = arith.constant 0 : i32
    return %c0_i32, %c0_i32_0 : i32, i32
  }
  func.func @transform_9(%arg0: i32, %arg1: i32) -> (i32, i32) {
    %c2_i32 = arith.constant 2 : i32
    %0 = arith.muli %arg0, %c2_i32 : i32
    %1 = arith.addi %0, %arg1 : i32
    %c0_i32 = arith.constant 0 : i32
    %c0_i32_0 = arith.constant 0 : i32
    return %c0_i32, %1 : i32, i32
  }
}

</mosaic_0001>

<bundles_post_ra>
// kernel: enhance_forward_pallas.1
= control target key start
LH: loop header
LB: loop body
LE: loop exit
PB: predicated region body
PF: predicated region fallthrough
CT: control target
= control target key end

     0   :  { %s2471_s30 = smov 0   ;;  %s2473_s10 = smov 0   ;;  %s3289_s0 = inlined_call_operand.vmem [shape: f32[8,1024], index: 0, kind: input, shape index: {}]   ;;  %s3290_s1 = inlined_call_operand.vmem [shape: s32[8,384], index: 1, kind: input, shape index: {}]   ;;  %s3291_s2 = inlined_call_operand.vmem [shape: s32[8,384], index: 2, kind: input, shape index: {}]   ;;  %s3292_s3 = inlined_call_operand.vmem [shape: f32[8,72], index: 3, kind: input, shape index: {}]   ;;  %s3293_s4 = inlined_call_operand.vmem [shape: f32[8,1], index: 4, kind: input, shape index: {}]   ;;  %s3294_s5 = inlined_call_operand.vmem [shape: f32[8,72], index: 5, kind: input, shape index: {}]   ;;  %s3295_s6 = inlined_call_operand.vmem [shape: f32[8,1], index: 6, kind: input, shape index: {}]   ;;  %s3296_s7 = inlined_call_operand.vmem [shape: f32[8,72], index: 7, kind: input, shape index: {}]   ;;  %s3297_s8 = inlined_call_operand.vmem [shape: f32[8,1], index: 8, kind: input, shape index: {}]   ;;  %s3298_s9 = inlined_call_operand.vmem [shape: f32[8,512], index: 9, kind: output, shape index: {}]  }
   0x1   :  { %s2475_s11 = smov 0   ;;  %s2477_s12 = smov 0  }
   0x2   :  { %s2479_s13 = smov 0  }
   0x3 LB: > { %s28_s14 = sadd.s32 1, %s2402_s11  ;;  %s31_s15 = sadd.s32 1, %s2406_s12  ;;  %s2410_s13 = sphi %s2479_s13, %s19_s13   ;;  %s2406_s12 = sphi %s2477_s12, %s3302_s12   ;;  %s2402_s11 = sphi %s2475_s11, %s3301_s11   ;;  %s2398_s10 = sphi %s2473_s10, %s3300_s10   ;;  %s2394_s30 = sphi %s2471_s30, %s3299_s30  }
   0x4   : > { %p29_p0 = scmp.ge.s32.totalorder %s28_s14, 2  ;;  %p1868_p1 = scmp.ge.s32.totalorder %s2410_s13, 1 }
   0x5   : > { %p269_p2 = scmp.lt.s32.totalorder %s2410_s13, 5 }
   0x6   : > { %s3304_s14 = smov (%p29_p0, %s28_s14), 0  ;;  %s3306_s15 = smov (!%p29_p0, %s31_s15), %s2406_s12 }
   0x7   : > { %p270_p3 = pnand %p1868_p1, %p269_p2  ;;  %p33_p4 = scmp.ge.s32.totalorder %s3306_s15, 2 }
   0x8   : > { %s1869_s16 = sshll.u32 (!%p270_p3), %s2398_s10, 1  ;;  %s1871_s17 = sshll.u32 (!%p270_p3), %s2398_s10, 9 }
   0x9   : > { %s3308_s15 = smov (%p33_p4, %s3306_s15), 0  ;;  %273 = sbr.rel (%p270_p3) target bundleno = 2590 (0xa1e), region = 52 }
   0xa   : > { %s300_s18 = sadd.s32 (!%p270_p3), %s2394_s30, %s1869_s16  ;;  %s1872_s19 = sshll.u32 (!%p270_p3), %s2394_s30, 7 }
   0xb   : > { %p301_p5 = scmp.lt.s32.totalorder (!%p270_p3), %s300_s18, 3  ;;  %s309_s20 = sadd.s32 (!%p270_p3), %s1872_s19, %s1871_s17 }
   0xc   : > { %s310_s21 = sshra.s32 (!%p270_p3), %s309_s20, 7 }
   0xd   : > { %s1873_s22 = sshll.u32 (!%p270_p3), %s310_s21, 3 }
   0xe   : > { %s313_s26 = scalar_lea.vmem (!%p270_p3), %s3289_s0, %s1873_s22 }
   0xf   : > { %v2513_v0 = vld [vmem:[%s313_s26] sm:$0xff] (!%p270_p3)  ;;  %v2515_v1 = vld [vmem:[%s313_s26 + $0x8] sm:$0xff] (!%p270_p3)  ;;  %v350_v2 = vld [vmem:[%s313_s26 + $0x10] sm:$0xff] (!%p270_p3) }
  0x10   : > { %s3310_s18 = smov (!%p301_p5, %s300_s18), 3 }
  0x11   : > { %s1870_s23 = sshll.u32 %s3310_s18, 3 }
  0x12   : > { %s2511_s29 = scalar_lea.vmem %s3298_s9, %s1870_s23 }
  0x13   : > { %359 = vsyncadd [#allocation4], 384 }
  0x14   : > { %2390 = dma.done.wait [#allocation4], 384 }
  0x15   : > { %2391 = vsyncadd [#allocation4], 4294966912  ;;  %s1874_s10 = sshll.u32 %s2394_s30, 3  ;;  %v2412_v3 = vmov 0.0   ;;  %v368_v5 = vld [vmem:[%s3290_s1 + $0x10] sm:$0xff]  ;;  %v366_v6 = vld [vmem:[%s3290_s1] sm:$0xff]  ;;  %v413_v18 = vlaneseq }
  0x16   : > { %619 = vmatprep.mubr.f32.mxu0 %v2412_v3  ;;  %s1875_s16 = sadd.s32 4294967291, %s1874_s10  ;;  %v367_v7 = vld [vmem:[%s3290_s1 + $0x8] sm:$0xff]  ;;  %s2413_s30 = smov 1   ;;  %v385_v20 = vld [vmem:[%s3291_s2] sm:$0xff]  ;;  %v387_v23 = vld [vmem:[%s3291_s2 + $0x10] sm:$0xff]  ;;  %v2416_v33 = vmov 0.0|0.0  }
  0x17   : > { %v369_v4 = vstv %s1875_s16  ;;  %s2414_s23 = smov 127   ;;  %s2415_s24 = smov 16   ;;  %v2563_v19 = vand.u32 127, %v413_v18  ;;  %v386_v21 = vld [vmem:[%s3291_s2 + $0x8] sm:$0xff]  ;;  %vm388_vm9 = vcmp.gt.s32.totalorder %v385_v20, 0  ;;  %vm390_vm12 = vcmp.gt.s32.totalorder %v387_v23, 0  ;;  %2028 = vmatprep.subr.bf16.mxu1 %v2416_v33 }
  0x18   : > { %v372_v8 = vadd.s32 %v369_v4, %v368_v5  ;;  %v370_v9 = vadd.s32 %v369_v4, %v366_v6  ;;  %v371_v10 = vadd.s32 %v369_v4, %v367_v7  ;;  %vm389_vm11 = vcmp.gt.s32.totalorder %v386_v21, 0  ;;  %s2417_s17 = smov 112   ;;  %v545_v55 = vld [vmem:[%s3293_s4] sm:$0xff]  ;;  %s2420_s10 = smov 48  }
  0x19   : > { %vm415_vm10 = vcmp.lt.s32.totalorder %v2563_v19, 1  ;;  %v2576_v25 = vsel %vm388_vm9, 1.0, %v2412_v3  ;;  %v2581_v28 = vsel %vm389_vm11, 1.0, %v2412_v3  ;;  %vm394_vm13 = vcmp.lt.s32.totalorder %v385_v20, 15 }
  0x1a   : > { %vm375_vm0 = vcmp.ge.s32.totalorder %v372_v8, 0  ;;  %vm378_vm1 = vcmp.lt.s32.totalorder %v372_v8, 16  ;;  %vm373_vm2 = vcmp.ge.s32.totalorder %v370_v9, 0  ;;  %vm376_vm3 = vcmp.lt.s32.totalorder %v370_v9, 16 }
  0x1b   : > { %vm381_vm4 = vmand %vm375_vm0, %vm378_vm1  ;;  %vm374_vm5 = vcmp.ge.s32.totalorder %v371_v10, 0  ;;  %vm377_vm6 = vcmp.lt.s32.totalorder %v371_v10, 16  ;;  %vm395_vm14 = vcmp.lt.s32.totalorder %v386_v21, 15  ;;  %v2584_v30 = vsel %vm390_vm12, 1.0, %v2412_v3 }
  0x1c   : > { %v2529_v11 = vsel %vm381_vm4, 1.0, %v2412_v3  ;;  %vm379_vm7 = vmand %vm373_vm2, %vm376_vm3  ;;  %vm428_vm15 = vcmp.lt.s32.totalorder %v2563_v19, 127  ;;  %v2599_v37 = vsel %vm394_vm13, 1.0, %v2412_v3  ;;  %v2602_v38 = vsel %vm395_vm14, 1.0, %v2412_v3 }
  0x1d   : > { %v2532_v12 = vmul.f32 %v2529_v11, %v350_v2  ;;  %v2535_v13 = vsel %vm379_vm7, 1.0, %v2412_v3  ;;  %vm380_vm8 = vmand %vm374_vm5, %vm377_vm6  ;;  %vm396_vm0 = vcmp.lt.s32.totalorder %v387_v23, 15  ;;  %vm2418_vm1 = vmmov 0  }
  0x1e   : > { %v2539_v14 = vmul.f32 %v2535_v13, %v2513_v0  ;;  %v2542_v15 = vsel %vm380_vm8, 1.0, %v2412_v3  ;;  %v2625_v48 = vsel %vm396_vm0, 1.0, %v2412_v3  ;;  %1946 = vmatprep.mubr.msk.f32.mxu1 %vm2418_vm1, %v2412_v3  ;;  %v2419_v54 = vmov 0  }
  0x1f   : > { %411 = vrot.lane.b32.xlu1 %v2532_v12, %s2413_s30  ;;  %v2550_v16 = vmul.f32 %v2542_v15, %v2515_v1  ;;  %2365 = vset.pattern.permute.xlu0 %v2419_v54  ;;  %vm441_vm2 = vcmp.lt.s32.totalorder %v2563_v19, 16  ;;  %vm487_vm3 = vcmp.lt.s32.totalorder %v2563_v19, 112  ;;  %vm551_vm4 = vcmask 588800  }
  0x20   : > { %407 = vrot.lane.b32.xlu0 %v2539_v14, %s2413_s30  ;;  %2224 = vset.pattern.permute.xlu1 %v2419_v54  ;;  %vm1784_vm5 = vcmask 392192  }
  0x21   : > { %v2189_v17 = vpack.i.bf16 %v2550_v16, %v2539_v14  ;;  %v2209_v52 = vpack.i.bf16 %v2532_v12, %v2550_v16 }
  0x23   : > { %422 = vrot.lane.b32.xlu1 %v2539_v14, %s2414_s23 }
  0x24   : > { %409 = vrot.lane.b32.xlu0 %v2550_v16, %s2413_s30 }
  0x27   : > { %426 = vrot.lane.b32.xlu1 %v2532_v12, %s2414_s23 }
  0x28   : > { %424 = vrot.lane.b32.xlu0 %v2550_v16, %s2414_s23 }
  0x2b   : > { %2190 = vrot.lane.b32.xlu1 %v2189_v17, %s2415_s24 }
  0x91   : > { %v412_v22 = vpop.permute.xlu1 %411 }
  0x92   : > { %v408_v24 = vpop.permute.xlu0 %407 }
  0x93   : > { %v418_v26 = vsel %vm415_vm10, %v412_v22, %v408_v24 }
  0x94   : > { %v2592_v34 = vmul.f32 %v418_v26, %v2576_v25 }
  0x95   : > { %v423_v27 = vpop.permute.xlu1 %422 }
  0x96   : > { %v410_v29 = vpop.permute.xlu0 %409  ;;  %v2219_v53 = vpack.i.bf16 %v2539_v14, %v2592_v34 }
  0x97   : > { %v416_v31 = vsel %vm415_vm10, %v410_v29, %v412_v22  ;;  %v417_v32 = vsel %vm415_vm10, %v408_v24, %v410_v29 }
  0x98   : > { %v2595_v35 = vmul.f32 %v417_v32, %v2581_v28  ;;  %v2605_v39 = vmul.f32 %v416_v31, %v2584_v30 }
  0x99   : > { %v427_v36 = vpop.permute.xlu1 %426 }
  0x9a   : > { %v425_v40 = vpop.permute.xlu0 %424  ;;  %v2194_v41 = vpack.i.bf16 %v2595_v35, %v2592_v34  ;;  %v2199_v46 = vpack.i.bf16 %v2532_v12, %v2605_v39  ;;  %v431_v49 = vsel %vm428_vm15, %v427_v36, %v423_v27  ;;  %v2214_v51 = vpack.i.bf16 %v2605_v39, %v2595_v35 }
  0x9b   : > { %v429_v42 = vsel %vm428_vm15, %v425_v40, %v427_v36  ;;  %v430_v43 = vsel %vm428_vm15, %v423_v27, %v425_v40  ;;  %v2632_v50 = vmul.f32 %v431_v49, %v2625_v48 }
  0x9c   : > { %v2614_v44 = vmul.f32 %v430_v43, %v2599_v37  ;;  %v2617_v45 = vmul.f32 %v429_v42, %v2602_v38  ;;  %2195 = vrot.lane.b32.xlu0 %v2194_v41, %s2415_s24 }
  0x9d   : > { %v2191_v56 = vpop.permute.xlu1 %2190 }
  0x9e   : > { %v2204_v47 = vpack.i.bf16 %v2617_v45, %v2614_v44  ;;  %v2193_v57 = vunpack.i.h.bf16 %v2191_v56  ;;  %v2192_v58 = vunpack.i.l.bf16 %v2191_v56 }
  0xa0   : > { %2200 = vrot.lane.b32.xlu0 %v2199_v46, %s2415_s24  ;;  %2205 = vrot.lane.b32.xlu1 %v2204_v47, %s2415_s24  ;;  %v455_v62 = vsel %vm441_vm2, %v2192_v58, %v2193_v57  ;;  %v2020_v46 = vpack.c.bf16 %v2617_v45, %v2550_v16  ;;  %v2035_v16 = vpack.c.bf16 %v2632_v50, %v2532_v12 }
  0xa4   : > { %464 = vrot.lane.b32.xlu0 %v2632_v50, %s2415_s24  ;;  %2215 = vrot.lane.b32.xlu1 %v2214_v51, %s2417_s17 }
  0xa8   : > { %2210 = vrot.lane.b32.xlu0 %v2209_v52, %s2417_s17  ;;  %2220 = vrot.lane.b32.xlu1 %v2219_v53, %s2417_s17  ;;  %v2022_v53 = vpack.c.bf16 %v2614_v44, %v2539_v14 }
  0xac   : > { %508 = vrot.lane.b32.xlu0 %v2617_v45, %s2417_s17  ;;  %510 = vrot.lane.b32.xlu1 %v2632_v50, %s2417_s17 }
  0xb0   : > { %506 = vrot.lane.b32.xlu0 %v2614_v44, %s2417_s17  ;;  %548 = vperm.xlu1 %2224, %v545_v55  }
 0x10e   : > { %v2196_v59 = vpop.permute.xlu0 %2195 }
 0x10f   : > { %v2198_v60 = vunpack.i.h.bf16 %v2196_v59  ;;  %v2197_v61 = vunpack.i.l.bf16 %v2196_v59  ;;  %v403_v59 = vld [vmem:[%s3292_s3] sm:$0xff] }
 0x111   : > { %v443_v63 = vsel %vm441_vm2, %v2197_v61, %v2198_v60 }
 0x112   : > { %v2206_v2 = vpop.permute.xlu1 %2205  ;;  %v2201_v4 = vpop.permute.xlu0 %2200  ;;  %v2012_v5 = vpack.c.bf16 %v455_v62, %v443_v63 }
 0x113   : > { %v2208_v6 = vunpack.i.h.bf16 %v2206_v2  ;;  %v2207_v7 = vunpack.i.l.bf16 %v2206_v2  ;;  %v2203_v8 = vunpack.i.h.bf16 %v2201_v4  ;;  %v2202_v9 = vunpack.i.l.bf16 %v2201_v4 }
 0x114   : > { %2013 = vmatprep.subr.bf16.mxu0 %v2012_v5 }
 0x115   : > { %v444_v10 = vsel %vm441_vm2, %v2202_v9, %v2197_v61  ;;  %v456_v17 = vsel %vm441_vm2, %v2203_v8, %v2192_v58  ;;  %v442_v18 = vsel %vm441_vm2, %v2198_v60, %v2202_v9  ;;  %v454_v20 = vsel %vm441_vm2, %v2193_v57, %v2203_v8 }
 0x116   : > { %v2216_v21 = vpop.permute.xlu1 %2215  ;;  %v465_v22 = vpop.permute.xlu0 %464  ;;  %v2014_v23 = vpack.c.bf16 %v456_v17, %v444_v10  ;;  %v2029_v24 = vpack.c.bf16 %v454_v20, %v442_v18  ;;  %v467_v26 = vsel %vm441_vm2, %v2207_v7, %v2208_v6 }
 0x117   : > { %v466_v27 = vsel %vm441_vm2, %v2208_v6, %v465_v22  ;;  %v468_v29 = vsel %vm441_vm2, %v465_v22, %v2207_v7  ;;  %v2016_v31 = vpack.c.bf16 %v2595_v35, %v467_v26  ;;  %v2218_v32 = vunpack.i.h.bf16 %v2216_v21 }
 0x118   : > { %2015 = vmatpush1.bf16.msra.mxu0 %v2014_v23  ;;  %2030 = vmatpush3.bf16.msra.mxu1 %v2029_v24  ;;  %v2217_v36 = vunpack.i.l.bf16 %v2216_v21  ;;  %v2018_v40 = vpack.c.bf16 %v2592_v34, %v468_v29  ;;  %v2032_v41 = vpack.c.bf16 %v2605_v39, %v466_v27 }
 0x119   : > { %2031 = vmatprep.subr.bf16.mxu1 %v2416_v33  ;;  %2017 = vmatprep.subr.bf16.mxu0 %v2016_v31 }
 0x11a   : > { %v2221_v42 = vpop.permute.xlu1 %2220  ;;  %v2211_v43 = vpop.permute.xlu0 %2210  ;;  %v488_v34 = vsel %vm487_vm3, %v2217_v36, %v2218_v32 }
 0x11b   : > { %v2223_v47 = vunpack.i.h.bf16 %v2221_v42  ;;  %v2222_v49 = vunpack.i.l.bf16 %v2221_v42  ;;  %v2213_v51 = vunpack.i.h.bf16 %v2211_v43  ;;  %v2212_v35 = vunpack.i.l.bf16 %v2211_v43 }
 0x11c   : > { %2019 = vmatpush1.bf16.msra.mxu0 %v2018_v40  ;;  %2033 = vmatpush3.bf16.msra.mxu1 %v2032_v41 }
 0x11d   : > { %2021 = vmatprep.subr.bf16.mxu0 %v2020_v46  ;;  %2034 = vmatprep.subr.bf16.mxu1 %v2416_v33  ;;  %v500_v39 = vsel %vm487_vm3, %v2212_v35, %v2213_v51  ;;  %v489_v54 = vsel %vm487_vm3, %v2222_v49, %v2217_v36  ;;  %v501_v55 = vsel %vm487_vm3, %v2223_v47, %v2212_v35 }
 0x11e   : > { %v509_v52 = vpop.permute.xlu0 %508  ;;  %v2024_v45 = vpack.c.bf16 %v500_v39, %v488_v34  ;;  %v490_v56 = vsel %vm487_vm3, %v2218_v32, %v2222_v49  ;;  %v502_v57 = vsel %vm487_vm3, %v2213_v51, %v2223_v47  ;;  %v511_v58 = vpop.permute.xlu1 %510  ;;  %v2026_v12 = vpack.c.bf16 %v501_v55, %v489_v54  ;;  %v700_v55 = vld [vmem:[%s3295_s6] sm:$0xff] }
 0x11f   : > { %v2038_v14 = vpack.c.bf16 %v502_v57, %v490_v56  ;;  %v512_v50 = vsel %vm487_vm3, %v509_v52, %v511_v58 }
 0x120   : > { %2023 = vmatpush1.bf16.msra.mxu0 %v2022_v53  ;;  %2036 = vmatpush3.bf16.msra.mxu1 %v2035_v16 }
 0x121   : > { %2025 = vmatprep.subr.bf16.mxu0 %v2024_v45  ;;  %2037 = vmatprep.subr.bf16.mxu1 %v2416_v33 }
 0x122   : > { %v507_v44 = vpop.permute.xlu0 %506 }
 0x123   : > { %v513_v60 = vsel %vm487_vm3, %v507_v44, %v509_v52  ;;  %v514_v61 = vsel %vm487_vm3, %v511_v58, %v507_v44 }
 0x124   : > { %2027 = vmatpush1.bf16.msra.mxu0 %v2026_v12  ;;  %2039 = vmatpush3.bf16.msra.mxu1 %v2038_v14 }
 0x125   : > { %571 = vmatprep.subr.mxu0 %v512_v50  ;;  %1944 = vmatprep.subr.mxu1 %v2412_v3 }
 0x128   : > { %572 = vmatpush1.msra.mxu0 %v513_v60  ;;  %1945 = vmatpush3.msra.mxu1 %v514_v61 }
 0x129   : > { %1876 = vmatmul.mubr.msk.f32.vlgmr.msra.gmra.mrb[0].mxu0 %vm551_vm4, %v403_v59  ;;  %1947 = vmatmul.mubr.msk.f32.vlgmr.msra.gmra.mrb[0].mxu1 %vm551_vm4, %v403_v59 }
 0x12a   : > { %2056 = vmatprep.subr.bf16.mxu1 %v2416_v33  ;;  %908 = vmatprep.mubr.f32.mxu0 %v2412_v3 }
 0x12b   : > { %1967 = vmatprep.mubr.msk.f32.mxu1 %vm2418_vm1, %v2412_v3 }
 0x12f   : > { %v549_v62 = vpop.permute.xlu1 %548 }
 0x1fc   : > { %v621_v63 = vpop.f32.mrb[0].mxu0  ;;  %v692_v2 = vpop.f32.mrb[0].mxu1 }
 0x1fd   : > { %v2716_v4 = vadd.f32 %v621_v63, %v549_v62  ;;  %v2718_v5 = vadd.f32 %v692_v2, %v549_v62  ;;  %v623_v6 = vpop.f32.mrb[1].mxu0  ;;  %v1948_v7 = vpop.f32.mrb[1].mxu1 }
 0x1fe   : > { %v2720_v8 = vadd.f32 %v623_v6, %v549_v62 }
 0x1ff   : > { %v696_v9 = vmax.f32 %v2716_v4, 0.0  ;;  %v698_v10 = vmax.f32 %v2718_v5, 0.0 }
 0x200   : > { %v697_v20 = vmax.f32 %v2720_v8, 0.0 }
 0x201   : > { %v2727_v17 = vmul.f32 %v696_v9, %v2535_v13  ;;  %v2732_v18 = vmul.f32 %v698_v10, %v2529_v11 }
 0x202   : > { %v2742_v21 = vmul.f32 %v697_v20, %v2542_v15 }
 0x203   : > { %708 = vrot.lane.b32.xlu0 %v2732_v18, %s2413_s30  ;;  %716 = vrot.lane.b32.xlu1 %v2727_v17, %s2414_s23 }
 0x204   : > { %v2225_v22 = vpack.i.bf16 %v2742_v21, %v2727_v17  ;;  %v2245_v45 = vpack.i.bf16 %v2732_v18, %v2742_v21 }
 0x207   : > { %706 = vrot.lane.b32.xlu1 %v2742_v21, %s2413_s30  ;;  %704 = vrot.lane.b32.xlu0 %v2727_v17, %s2413_s30 }
 0x20b   : > { %720 = vrot.lane.b32.xlu1 %v2732_v18, %s2414_s23  ;;  %718 = vrot.lane.b32.xlu0 %v2742_v21, %s2414_s23 }
 0x20f   : > { %2226 = vrot.lane.b32.xlu1 %v2225_v22, %s2415_s24 }
 0x275   : > { %v709_v23 = vpop.permute.xlu0 %708  ;;  %v717_v24 = vpop.permute.xlu1 %716 }
 0x279   : > { %v707_v26 = vpop.permute.xlu1 %706  ;;  %v705_v27 = vpop.permute.xlu0 %704 }
 0x27a   : > { %v710_v29 = vsel %vm415_vm10, %v707_v26, %v709_v23  ;;  %v711_v31 = vsel %vm415_vm10, %v705_v27, %v707_v26  ;;  %v712_v32 = vsel %vm415_vm10, %v709_v23, %v705_v27 }
 0x27b   : > { %v2762_v36 = vmul.f32 %v712_v32, %v2576_v25  ;;  %v2765_v40 = vmul.f32 %v711_v31, %v2581_v28  ;;  %v2768_v41 = vmul.f32 %v710_v29, %v2584_v30 }
 0x27d   : > { %v721_v42 = vpop.permute.xlu1 %720  ;;  %v719_v43 = vpop.permute.xlu0 %718  ;;  %v2230_v46 = vpack.i.bf16 %v2765_v40, %v2762_v36  ;;  %v2235_v34 = vpack.i.bf16 %v2732_v18, %v2768_v41  ;;  %v2250_v16 = vpack.i.bf16 %v2768_v41, %v2765_v40  ;;  %v2255_v54 = vpack.i.bf16 %v2727_v17, %v2762_v36 }
 0x27e   : > { %v722_v47 = vsel %vm428_vm15, %v719_v43, %v721_v42  ;;  %v723_v49 = vsel %vm428_vm15, %v717_v24, %v719_v43  ;;  %v724_v52 = vsel %vm428_vm15, %v721_v42, %v717_v24 }
 0x27f   : > { %v2777_v51 = vmul.f32 %v723_v49, %v2599_v37  ;;  %v2780_v35 = vmul.f32 %v722_v47, %v2602_v38  ;;  %2231 = vrot.lane.b32.xlu0 %v2230_v46, %s2415_s24  ;;  %v2792_v53 = vmul.f32 %v724_v52, %v2625_v48 }
 0x281   : > { %v2240_v39 = vpack.i.bf16 %v2780_v35, %v2777_v51  ;;  %v2227_v56 = vpop.permute.xlu1 %2226  ;;  %v2048_v49 = vpack.c.bf16 %v2780_v35, %v2742_v21  ;;  %v2050_v21 = vpack.c.bf16 %v2777_v51, %v2727_v17 }
 0x282   : > { %v2229_v57 = vunpack.i.h.bf16 %v2227_v56  ;;  %v2228_v58 = vunpack.i.l.bf16 %v2227_v56 }
 0x283   : > { %2236 = vrot.lane.b32.xlu0 %v2235_v34, %s2415_s24  ;;  %2241 = vrot.lane.b32.xlu1 %v2240_v39, %s2415_s24 }
 0x284   : > { %v747_v59 = vsel %vm441_vm2, %v2228_v58, %v2229_v57 }
 0x287   : > { %756 = vrot.lane.b32.xlu0 %v2792_v53, %s2415_s24  ;;  %2251 = vrot.lane.b32.xlu1 %v2250_v16, %s2417_s17 }
 0x28b   : > { %2246 = vrot.lane.b32.xlu0 %v2245_v45, %s2417_s17  ;;  %2256 = vrot.lane.b32.xlu1 %v2255_v54, %s2417_s17 }
 0x28f   : > { %799 = vrot.lane.b32.xlu0 %v2780_v35, %s2417_s17  ;;  %801 = vrot.lane.b32.xlu1 %v2792_v53, %s2417_s17 }
 0x293   : > { %797 = vrot.lane.b32.xlu0 %v2777_v51, %s2417_s17  ;;  %838 = vperm.xlu1 %2224, %v700_v55  }
 0x2f1   : > { %v2232_v12 = vpop.permute.xlu0 %2231 }
 0x2f2   : > { %v2234_v14 = vunpack.i.h.bf16 %v2232_v12  ;;  %v2233_v44 = vunpack.i.l.bf16 %v2232_v12 }
 0x2f4   : > { %v735_v50 = vsel %vm441_vm2, %v2233_v44, %v2234_v14 }
 0x2f5   : > { %v2242_v60 = vpop.permute.xlu1 %2241  ;;  %v2237_v61 = vpop.permute.xlu0 %2236  ;;  %v2040_v62 = vpack.c.bf16 %v747_v59, %v735_v50 }
 0x2f6   : > { %v2244_v63 = vunpack.i.h.bf16 %v2242_v60  ;;  %v2243_v2 = vunpack.i.l.bf16 %v2242_v60  ;;  %v2239_v6 = vunpack.i.h.bf16 %v2237_v61  ;;  %v2238_v7 = vunpack.i.l.bf16 %v2237_v61  ;;  %v2862_v61 = vld [vmem:[%s3294_s5] sm:$0xff] }
 0x2f7   : > { %2041 = vmatprep.subr.bf16.mxu0 %v2040_v62 }
 0x2f8   : > { %v746_v22 = vsel %vm441_vm2, %v2229_v57, %v2239_v6  ;;  %v748_v23 = vsel %vm441_vm2, %v2239_v6, %v2228_v58  ;;  %v734_v24 = vsel %vm441_vm2, %v2234_v14, %v2238_v7  ;;  %v736_v26 = vsel %vm441_vm2, %v2238_v7, %v2233_v44 }
 0x2f9   : > { %v2042_v27 = vpack.c.bf16 %v748_v23, %v736_v26  ;;  %v2057_v29 = vpack.c.bf16 %v746_v22, %v734_v24  ;;  %v2252_v31 = vpop.permute.xlu1 %2251  ;;  %v757_v32 = vpop.permute.xlu0 %756  ;;  %v759_v42 = vsel %vm441_vm2, %v2243_v2, %v2244_v63 }
 0x2fa   : > { %v758_v43 = vsel %vm441_vm2, %v2244_v63, %v757_v32  ;;  %v760_v46 = vsel %vm441_vm2, %v757_v32, %v2243_v2  ;;  %v2044_v47 = vpack.c.bf16 %v2765_v40, %v759_v42  ;;  %v2254_v34 = vunpack.i.h.bf16 %v2252_v31 }
 0x2fb   : > { %2043 = vmatpush1.bf16.msra.mxu0 %v2042_v27  ;;  %2058 = vmatpush3.bf16.msra.mxu1 %v2057_v29  ;;  %v2253_v39 = vunpack.i.l.bf16 %v2252_v31  ;;  %v2046_v52 = vpack.c.bf16 %v2762_v36, %v760_v46  ;;  %v2060_v16 = vpack.c.bf16 %v2768_v41, %v758_v43  ;;  %v2063_v40 = vpack.c.bf16 %v2792_v53, %v2732_v18 }
 0x2fc   : > { %2059 = vmatprep.subr.bf16.mxu1 %v2416_v33  ;;  %2045 = vmatprep.subr.bf16.mxu0 %v2044_v47 }
 0x2fd   : > { %v2257_v45 = vpop.permute.xlu1 %2256  ;;  %v2247_v54 = vpop.permute.xlu0 %2246  ;;  %v779_v35 = vsel %vm487_vm3, %v2253_v39, %v2254_v34 }
 0x2fe   : > { %v2259_v55 = vunpack.i.h.bf16 %v2257_v45  ;;  %v2258_v56 = vunpack.i.l.bf16 %v2257_v45  ;;  %v2249_v57 = vunpack.i.h.bf16 %v2247_v54  ;;  %v2248_v58 = vunpack.i.l.bf16 %v2247_v54 }
 0x2ff   : > { %2047 = vmatpush1.bf16.msra.mxu0 %v2046_v52  ;;  %2061 = vmatpush3.bf16.msra.mxu1 %v2060_v16 }
 0x300   : > { %2049 = vmatprep.subr.bf16.mxu0 %v2048_v49  ;;  %v780_v36 = vsel %vm487_vm3, %v2258_v56, %v2253_v39  ;;  %2062 = vmatprep.subr.bf16.mxu1 %v2416_v33  ;;  %v791_v12 = vsel %vm487_vm3, %v2248_v58, %v2249_v57  ;;  %v781_v14 = vsel %vm487_vm3, %v2254_v34, %v2258_v56 }
 0x301   : > { %v800_v41 = vpop.permute.xlu0 %799  ;;  %v793_v18 = vsel %vm487_vm3, %v2249_v57, %v2259_v55  ;;  %v792_v17 = vsel %vm487_vm3, %v2259_v55, %v2248_v58  ;;  %v2052_v51 = vpack.c.bf16 %v791_v12, %v779_v35  ;;  %v802_v53 = vpop.permute.xlu1 %801 }
 0x302   : > { %v2066_v44 = vpack.c.bf16 %v793_v18, %v781_v14  ;;  %v2054_v50 = vpack.c.bf16 %v792_v17, %v780_v36  ;;  %v803_v60 = vsel %vm487_vm3, %v800_v41, %v802_v53 }
 0x303   : > { %2051 = vmatpush1.bf16.msra.mxu0 %v2050_v21  ;;  %2064 = vmatpush3.bf16.msra.mxu1 %v2063_v40 }
 0x304   : > { %2053 = vmatprep.subr.bf16.mxu0 %v2052_v51  ;;  %2065 = vmatprep.subr.bf16.mxu1 %v2416_v33 }
 0x305   : > { %v798_v59 = vpop.permute.xlu0 %797 }
 0x306   : > { %v804_v62 = vsel %vm487_vm3, %v798_v59, %v800_v41  ;;  %v805_v63 = vsel %vm487_vm3, %v802_v53, %v798_v59 }
 0x307   : > { %2055 = vmatpush1.bf16.msra.mxu0 %v2054_v50  ;;  %2067 = vmatpush3.bf16.msra.mxu1 %v2066_v44 }
 0x308   : > { %860 = vmatprep.subr.mxu0 %v803_v60  ;;  %1965 = vmatprep.subr.mxu1 %v2412_v3 }
 0x30b   : > { %861 = vmatpush1.msra.mxu0 %v804_v62  ;;  %1966 = vmatpush3.msra.mxu1 %v805_v63 }
 0x30c   : > { %1878 = vmatmul.mubr.msk.f32.vlgmr.msra.gmra.mrb[2].mxu0 %vm551_vm4, %v2862_v61  ;;  %1968 = vmatmul.mubr.msk.f32.vlgmr.msra.gmra.mrb[2].mxu1 %vm551_vm4, %v2862_v61 }
 0x30d   : > { %2084 = vmatprep.subr.bf16.mxu1 %v2416_v33  ;;  %1190 = vmatprep.mubr.f32.mxu0 %v2412_v3 }
 0x30e   : > { %1988 = vmatprep.mubr.msk.f32.mxu1 %vm2418_vm1, %v2412_v3 }
 0x312   : > { %v2876_v2 = vpop.permute.xlu1 %838 }
 0x3df   : > { %v910_v6 = vpop.f32.mrb[2].mxu0  ;;  %v981_v7 = vpop.f32.mrb[2].mxu1 }
 0x3e0   : > { %v911_v22 = vadd.f32 %v910_v6, %v2876_v2  ;;  %v982_v23 = vadd.f32 %v981_v7, %v2876_v2  ;;  %v912_v24 = vpop.f32.mrb[3].mxu0  ;;  %v1969_v26 = vpop.f32.mrb[3].mxu1 }
 0x3e1   : > { %v913_v27 = vadd.f32 %v912_v24, %v2876_v2 }
 0x3e2   : > { %v985_v29 = vmax.f32 %v911_v22, 0.0  ;;  %v987_v31 = vmax.f32 %v982_v23, 0.0 }
 0x3e3   : > { %v986_v32 = vmax.f32 %v913_v27, 0.0 }
 0x3e4   : > { %v2883_v42 = vadd.f32 %v985_v29, %v696_v9  ;;  %v2887_v43 = vadd.f32 %v987_v31, %v698_v10 }
 0x3e5   : > { %v2899_v49 = vadd.f32 %v986_v32, %v697_v20 }
 0x3e6   : > { %v2891_v46 = vmul.f32 %v2883_v42, %v2535_v13  ;;  %v2895_v47 = vmul.f32 %v2887_v43, %v2529_v11 }
 0x3e7   : > { %v2907_v4 = vmul.f32 %v2899_v49, %v2542_v15 }
 0x3e8   : > { %998 = vrot.lane.b32.xlu0 %v2895_v47, %s2413_s30  ;;  %1006 = vrot.lane.b32.xlu1 %v2891_v46, %s2414_s23 }
 0x3e9   : > { %v2260_v5 = vpack.i.bf16 %v2907_v4, %v2891_v46  ;;  %v2280_v17 = vpack.i.bf16 %v2895_v47, %v2907_v4 }
 0x3ec   : > { %996 = vrot.lane.b32.xlu1 %v2907_v4, %s2413_s30  ;;  %994 = vrot.lane.b32.xlu0 %v2891_v46, %s2413_s30 }
 0x3f0   : > { %1010 = vrot.lane.b32.xlu1 %v2895_v47, %s2414_s23  ;;  %1008 = vrot.lane.b32.xlu0 %v2907_v4, %s2414_s23 }
 0x3f4   : > { %2261 = vrot.lane.b32.xlu1 %v2260_v5, %s2415_s24 }
 0x45a   : > { %v999_v8 = vpop.permute.xlu0 %998  ;;  %v1007_v9 = vpop.permute.xlu1 %1006 }
 0x45e   : > { %v997_v10 = vpop.permute.xlu1 %996  ;;  %v995_v20 = vpop.permute.xlu0 %994 }
 0x45f   : > { %v1000_v34 = vsel %vm415_vm10, %v997_v10, %v999_v8  ;;  %v1001_v39 = vsel %vm415_vm10, %v995_v20, %v997_v10  ;;  %v1002_v52 = vsel %vm415_vm10, %v999_v8, %v995_v20 }
 0x460   : > { %v2927_v16 = vmul.f32 %v1002_v52, %v2576_v25  ;;  %v1004_v45 = vmul.f32 %v1001_v39, %v2581_v28  ;;  %v2931_v54 = vmul.f32 %v1000_v34, %v2584_v30 }
 0x462   : > { %v1011_v55 = vpop.permute.xlu1 %1010  ;;  %v1009_v56 = vpop.permute.xlu0 %1008  ;;  %v2265_v57 = vpack.i.bf16 %v1004_v45, %v2927_v16  ;;  %v2270_v41 = vpack.i.bf16 %v2895_v47, %v2931_v54  ;;  %v2285_v18 = vpack.i.bf16 %v2931_v54, %v1004_v45  ;;  %v2290_v51 = vpack.i.bf16 %v2891_v46, %v2927_v16 }
 0x463   : > { %v1012_v58 = vsel %vm428_vm15, %v1009_v56, %v1011_v55  ;;  %v1013_v40 = vsel %vm428_vm15, %v1007_v9, %v1009_v56  ;;  %v1014_v12 = vsel %vm428_vm15, %v1011_v55, %v1007_v9 }
 0x464   : > { %v2939_v21 = vmul.f32 %v1013_v40, %v2599_v37  ;;  %v2942_v36 = vmul.f32 %v1012_v58, %v2602_v38  ;;  %2266 = vrot.lane.b32.xlu0 %v2265_v57, %s2415_s24  ;;  %v2954_v14 = vmul.f32 %v1014_v12, %v2625_v48 }
 0x466   : > { %v2275_v35 = vpack.i.bf16 %v2942_v36, %v2939_v21  ;;  %v2262_v53 = vpop.permute.xlu1 %2261  ;;  %v2076_v57 = vpack.c.bf16 %v2942_v36, %v2907_v4  ;;  %v2078_v4 = vpack.c.bf16 %v2939_v21, %v2891_v46 }
 0x467   : > { %v2264_v44 = vunpack.i.h.bf16 %v2262_v53  ;;  %v2263_v50 = vunpack.i.l.bf16 %v2262_v53 }
 0x468   : > { %2271 = vrot.lane.b32.xlu0 %v2270_v41, %s2415_s24  ;;  %2276 = vrot.lane.b32.xlu1 %v2275_v35, %s2415_s24 }
 0x469   : > { %v1037_v6 = vsel %vm441_vm2, %v2263_v50, %v2264_v44 }
 0x46c   : > { %1046 = vrot.lane.b32.xlu0 %v2954_v14, %s2415_s24  ;;  %2286 = vrot.lane.b32.xlu1 %v2285_v18, %s2417_s17 }
 0x470   : > { %2281 = vrot.lane.b32.xlu0 %v2280_v17, %s2417_s17  ;;  %2291 = vrot.lane.b32.xlu1 %v2290_v51, %s2417_s17 }
 0x474   : > { %1089 = vrot.lane.b32.xlu0 %v2942_v36, %s2417_s17  ;;  %1091 = vrot.lane.b32.xlu1 %v2954_v14, %s2417_s17 }
 0x478   : > { %1087 = vrot.lane.b32.xlu0 %v2939_v21, %s2417_s17 }
 0x4d6   : > { %v2267_v59 = vpop.permute.xlu0 %2266 }
 0x4d7   : > { %v2269_v60 = vunpack.i.h.bf16 %v2267_v59  ;;  %v2268_v62 = vunpack.i.l.bf16 %v2267_v59 }
 0x4d9   : > { %v1025_v63 = vsel %vm441_vm2, %v2268_v62, %v2269_v60 }
 0x4da   : > { %v2277_v7 = vpop.permute.xlu1 %2276  ;;  %v2272_v22 = vpop.permute.xlu0 %2271  ;;  %v2068_v23 = vpack.c.bf16 %v1037_v6, %v1025_v63 }
 0x4db   : > { %v2279_v24 = vunpack.i.h.bf16 %v2277_v7  ;;  %v2278_v26 = vunpack.i.l.bf16 %v2277_v7  ;;  %v2274_v27 = vunpack.i.h.bf16 %v2272_v22  ;;  %v2273_v29 = vunpack.i.l.bf16 %v2272_v22 }
 0x4dc   : > { %2069 = vmatprep.subr.bf16.mxu0 %v2068_v23 }
 0x4dd   : > { %v1036_v31 = vsel %vm441_vm2, %v2264_v44, %v2274_v27  ;;  %v1038_v32 = vsel %vm441_vm2, %v2274_v27, %v2263_v50  ;;  %v1024_v5 = vsel %vm441_vm2, %v2269_v60, %v2273_v29  ;;  %v1026_v8 = vsel %vm441_vm2, %v2273_v29, %v2268_v62 }
 0x4de   : > { %v2070_v9 = vpack.c.bf16 %v1038_v32, %v1026_v8  ;;  %v2085_v10 = vpack.c.bf16 %v1036_v31, %v1024_v5  ;;  %v2287_v20 = vpop.permute.xlu1 %2286  ;;  %v1047_v34 = vpop.permute.xlu0 %1046  ;;  %v1049_v39 = vsel %vm441_vm2, %v2278_v26, %v2279_v24 }
 0x4df   : > { %v1048_v52 = vsel %vm441_vm2, %v2279_v24, %v1047_v34  ;;  %v1050_v55 = vsel %vm441_vm2, %v1047_v34, %v2278_v26  ;;  %v2072_v56 = vpack.c.bf16 %v1004_v45, %v1049_v39  ;;  %v2289_v58 = vunpack.i.h.bf16 %v2287_v20 }
 0x4e0   : > { %2071 = vmatpush1.bf16.msra.mxu0 %v2070_v9  ;;  %2086 = vmatpush3.bf16.msra.mxu1 %v2085_v10  ;;  %v2288_v40 = vunpack.i.l.bf16 %v2287_v20  ;;  %v2074_v41 = vpack.c.bf16 %v2927_v16, %v1050_v55  ;;  %v2088_v35 = vpack.c.bf16 %v2931_v54, %v1048_v52  ;;  %v2091_v45 = vpack.c.bf16 %v2954_v14, %v2895_v47 }
 0x4e1   : > { %2087 = vmatprep.subr.bf16.mxu1 %v2416_v33  ;;  %2073 = vmatprep.subr.bf16.mxu0 %v2072_v56 }
 0x4e2   : > { %v2292_v12 = vpop.permute.xlu1 %2291  ;;  %v2282_v18 = vpop.permute.xlu0 %2281  ;;  %v1069_v36 = vsel %vm487_vm3, %v2288_v40, %v2289_v58 }
 0x4e3   : > { %v2294_v17 = vunpack.i.h.bf16 %v2292_v12  ;;  %v2293_v51 = vunpack.i.l.bf16 %v2292_v12  ;;  %v2284_v53 = vunpack.i.h.bf16 %v2282_v18  ;;  %v2283_v44 = vunpack.i.l.bf16 %v2282_v18 }
 0x4e4   : > { %2075 = vmatpush1.bf16.msra.mxu0 %v2074_v41  ;;  %2089 = vmatpush3.bf16.msra.mxu1 %v2088_v35 }
 0x4e5   : > { %2077 = vmatprep.subr.bf16.mxu0 %v2076_v57  ;;  %v1070_v16 = vsel %vm487_vm3, %v2293_v51, %v2288_v40  ;;  %2090 = vmatprep.subr.bf16.mxu1 %v2416_v33  ;;  %v1081_v50 = vsel %vm487_vm3, %v2283_v44, %v2284_v53  ;;  %v1071_v59 = vsel %vm487_vm3, %v2289_v58, %v2293_v51 }
 0x4e6   : > { %v1090_v54 = vpop.permute.xlu0 %1089  ;;  %v1083_v47 = vsel %vm487_vm3, %v2284_v53, %v2294_v17  ;;  %v1082_v46 = vsel %vm487_vm3, %v2294_v17, %v2283_v44  ;;  %v2080_v21 = vpack.c.bf16 %v1081_v50, %v1069_v36  ;;  %v1092_v14 = vpop.permute.xlu1 %1091 }
 0x4e7   : > { %v2094_v60 = vpack.c.bf16 %v1083_v47, %v1071_v59  ;;  %v2082_v62 = vpack.c.bf16 %v1082_v46, %v1070_v16  ;;  %v1093_v6 = vsel %vm487_vm3, %v1090_v54, %v1092_v14 }
 0x4e8   : > { %2079 = vmatpush1.bf16.msra.mxu0 %v2078_v4  ;;  %2092 = vmatpush3.bf16.msra.mxu1 %v2091_v45 }
 0x4e9   : > { %2081 = vmatprep.subr.bf16.mxu0 %v2080_v21  ;;  %2093 = vmatprep.subr.bf16.mxu1 %v2416_v33 }
 0x4ea   : > { %v1088_v63 = vpop.permute.xlu0 %1087 }
 0x4eb   : > { %v1094_v7 = vsel %vm487_vm3, %v1088_v63, %v1090_v54  ;;  %v1095_v22 = vsel %vm487_vm3, %v1092_v14, %v1088_v63 }
 0x4ec   : > { %2083 = vmatpush1.bf16.msra.mxu0 %v2082_v62  ;;  %2095 = vmatpush3.bf16.msra.mxu1 %v2094_v60 }
 0x4ed   : > { %1142 = vmatprep.subr.mxu0 %v1093_v6  ;;  %1986 = vmatprep.subr.mxu1 %v2412_v3 }
 0x4f0   : > { %1143 = vmatpush1.msra.mxu0 %v1094_v7  ;;  %1987 = vmatpush3.msra.mxu1 %v1095_v22 }
 0x4f1   : > { %1880 = vmatmul.mubr.msk.f32.vlgmr.msra.gmra.mrb[4].mxu0 %vm551_vm4, %v2862_v61  ;;  %1989 = vmatmul.mubr.msk.f32.vlgmr.msra.gmra.mrb[4].mxu1 %vm551_vm4, %v2862_v61 }
 0x4f2   : > { %2112 = vmatprep.subr.bf16.mxu1 %v2416_v33  ;;  %1472 = vmatprep.mubr.f32.mxu0 %v2412_v3 }
 0x4f3   : > { %2009 = vmatprep.mubr.msk.f32.mxu1 %vm2418_vm1, %v2412_v3 }
 0x5c4   : > { %v1192_v23 = vpop.f32.mrb[4].mxu0  ;;  %v1263_v24 = vpop.f32.mrb[4].mxu1 }
 0x5c5   : > { %v1193_v26 = vadd.f32 %v1192_v23, %v2876_v2  ;;  %v1264_v27 = vadd.f32 %v1263_v24, %v2876_v2  ;;  %v1194_v29 = vpop.f32.mrb[5].mxu0  ;;  %v1990_v31 = vpop.f32.mrb[5].mxu1 }
 0x5c6   : > { %v1195_v32 = vadd.f32 %v1194_v29, %v2876_v2 }
 0x5c7   : > { %v1267_v5 = vmax.f32 %v1193_v26, 0.0  ;;  %v1269_v8 = vmax.f32 %v1264_v27, 0.0 }
 0x5c8   : > { %v1268_v9 = vmax.f32 %v1195_v32, 0.0 }
 0x5c9   : > { %v3032_v10 = vadd.f32 %v1267_v5, %v2883_v42  ;;  %v3035_v20 = vadd.f32 %v1269_v8, %v2887_v43 }
 0x5ca   : > { %v3046_v52 = vadd.f32 %v1268_v9, %v2899_v49 }
 0x5cb   : > { %v3039_v34 = vmul.f32 %v3032_v10, %v2535_v13  ;;  %v3043_v39 = vmul.f32 %v3035_v20, %v2529_v11 }
 0x5cc   : > { %v3054_v42 = vmul.f32 %v3046_v52, %v2542_v15 }
 0x5cd   : > { %1280 = vrot.lane.b32.xlu1 %v3043_v39, %s2413_s30  ;;  %1288 = vrot.lane.b32.xlu0 %v3039_v34, %s2414_s23 }
 0x5ce   : > { %v2295_v43 = vpack.i.bf16 %v3054_v42, %v3039_v34  ;;  %v2315_v46 = vpack.i.bf16 %v3043_v39, %v3054_v42 }
 0x5d1   : > { %1278 = vrot.lane.b32.xlu0 %v3054_v42, %s2413_s30  ;;  %1276 = vrot.lane.b32.xlu1 %v3039_v34, %s2413_s30 }
 0x5d5   : > { %1292 = vrot.lane.b32.xlu0 %v3043_v39, %s2414_s23  ;;  %1290 = vrot.lane.b32.xlu1 %v3054_v42, %s2414_s23 }
 0x5d9   : > { %2296 = vrot.lane.b32.xlu0 %v2295_v43, %s2415_s24 }
 0x63f   : > { %v1281_v49 = vpop.permute.xlu1 %1280  ;;  %v1289_v55 = vpop.permute.xlu0 %1288 }
 0x643   : > { %v1279_v56 = vpop.permute.xlu0 %1278  ;;  %v1277_v57 = vpop.permute.xlu1 %1276 }
 0x644   : > { %v1282_v58 = vsel %vm415_vm10, %v1279_v56, %v1281_v49  ;;  %v1283_v40 = vsel %vm415_vm10, %v1277_v57, %v1279_v56  ;;  %v1284_v41 = vsel %vm415_vm10, %v1281_v49, %v1277_v57 }
 0x645   : > { %v3074_v35 = vmul.f32 %v1284_v41, %v2576_v25  ;;  %v1286_v12 = vmul.f32 %v1283_v40, %v2581_v28  ;;  %v3078_v18 = vmul.f32 %v1282_v58, %v2584_v30 }
 0x647   : > { %v1293_v17 = vpop.permute.xlu0 %1292  ;;  %v1291_v51 = vpop.permute.xlu1 %1290  ;;  %v2300_v53 = vpack.i.bf16 %v1286_v12, %v3074_v35  ;;  %v2305_v54 = vpack.i.bf16 %v3043_v39, %v3078_v18  ;;  %v2320_v47 = vpack.i.bf16 %v3078_v18, %v1286_v12  ;;  %v2325_v21 = vpack.i.bf16 %v3039_v34, %v3074_v35 }
 0x648   : > { %v1294_v44 = vsel %vm428_vm15, %v1291_v51, %v1293_v17  ;;  %v1295_v45 = vsel %vm428_vm15, %v1289_v55, %v1291_v51  ;;  %v1296_v50 = vsel %vm428_vm15, %v1293_v17, %v1289_v55 }
 0x649   : > { %v3086_v4 = vmul.f32 %v1295_v45, %v2599_v37  ;;  %v3089_v16 = vmul.f32 %v1294_v44, %v2602_v38  ;;  %2301 = vrot.lane.b32.xlu1 %v2300_v53, %s2415_s24  ;;  %v3101_v59 = vmul.f32 %v1296_v50, %v2625_v48 }
 0x64b   : > { %v2310_v36 = vpack.i.bf16 %v3089_v16, %v3086_v4  ;;  %v2297_v14 = vpop.permute.xlu0 %2296  ;;  %v2104_v53 = vpack.c.bf16 %v3089_v16, %v3054_v42  ;;  %v2106_v42 = vpack.c.bf16 %v3086_v4, %v3039_v34 }
 0x64c   : > { %v2299_v60 = vunpack.i.h.bf16 %v2297_v14  ;;  %v2298_v62 = vunpack.i.l.bf16 %v2297_v14 }
 0x64d   : > { %2306 = vrot.lane.b32.xlu1 %v2305_v54, %s2415_s24  ;;  %2311 = vrot.lane.b32.xlu0 %v2310_v36, %s2415_s24 }
 0x64e   : > { %v1319_v23 = vsel %vm441_vm2, %v2298_v62, %v2299_v60 }
 0x651   : > { %1328 = vrot.lane.b32.xlu1 %v3101_v59, %s2415_s24  ;;  %2321 = vrot.lane.b32.xlu0 %v2320_v47, %s2417_s17 }
 0x655   : > { %2316 = vrot.lane.b32.xlu1 %v2315_v46, %s2417_s17  ;;  %2326 = vrot.lane.b32.xlu0 %v2325_v21, %s2417_s17 }
 0x659   : > { %1371 = vrot.lane.b32.xlu1 %v3089_v16, %s2417_s17  ;;  %1373 = vrot.lane.b32.xlu0 %v3101_v59, %s2417_s17 }
 0x65d   : > { %1369 = vrot.lane.b32.xlu1 %v3086_v4, %s2417_s17 }
 0x6bb   : > { %v2302_v63 = vpop.permute.xlu1 %2301 }
 0x6bc   : > { %v2304_v6 = vunpack.i.h.bf16 %v2302_v63  ;;  %v2303_v7 = vunpack.i.l.bf16 %v2302_v63 }
 0x6be   : > { %v1307_v22 = vsel %vm441_vm2, %v2303_v7, %v2304_v6 }
 0x6bf   : > { %v2312_v24 = vpop.permute.xlu0 %2311  ;;  %v2307_v26 = vpop.permute.xlu1 %2306  ;;  %v2096_v27 = vpack.c.bf16 %v1319_v23, %v1307_v22 }
 0x6c0   : > { %v2314_v29 = vunpack.i.h.bf16 %v2312_v24  ;;  %v2313_v31 = vunpack.i.l.bf16 %v2312_v24  ;;  %v2309_v32 = vunpack.i.h.bf16 %v2307_v26  ;;  %v2308_v5 = vunpack.i.l.bf16 %v2307_v26 }
 0x6c1   : > { %2097 = vmatprep.subr.bf16.mxu0 %v2096_v27 }
 0x6c2   : > { %v1318_v8 = vsel %vm441_vm2, %v2299_v60, %v2309_v32  ;;  %v1320_v9 = vsel %vm441_vm2, %v2309_v32, %v2298_v62  ;;  %v1306_v43 = vsel %vm441_vm2, %v2304_v6, %v2308_v5  ;;  %v1308_v49 = vsel %vm441_vm2, %v2308_v5, %v2303_v7 }
 0x6c3   : > { %v2098_v55 = vpack.c.bf16 %v1320_v9, %v1308_v49  ;;  %v2113_v56 = vpack.c.bf16 %v1318_v8, %v1306_v43  ;;  %v2322_v57 = vpop.permute.xlu0 %2321  ;;  %v1329_v58 = vpop.permute.xlu1 %1328  ;;  %v1331_v40 = vsel %vm441_vm2, %v2313_v31, %v2314_v29 }
 0x6c4   : > { %v1330_v41 = vsel %vm441_vm2, %v2314_v29, %v1329_v58  ;;  %v1332_v17 = vsel %vm441_vm2, %v1329_v58, %v2313_v31  ;;  %v2100_v51 = vpack.c.bf16 %v1286_v12, %v1331_v40  ;;  %v2324_v44 = vunpack.i.h.bf16 %v2322_v57 }
 0x6c5   : > { %2099 = vmatpush1.bf16.msra.mxu0 %v2098_v55  ;;  %2114 = vmatpush3.bf16.msra.mxu1 %v2113_v56  ;;  %v2323_v45 = vunpack.i.l.bf16 %v2322_v57  ;;  %v2102_v54 = vpack.c.bf16 %v3074_v35, %v1332_v17  ;;  %v2116_v36 = vpack.c.bf16 %v3078_v18, %v1330_v41  ;;  %v2119_v12 = vpack.c.bf16 %v3101_v59, %v3043_v39 }
 0x6c6   : > { %2115 = vmatprep.subr.bf16.mxu1 %v2416_v33  ;;  %2101 = vmatprep.subr.bf16.mxu0 %v2100_v51 }
 0x6c7   : > { %v2327_v50 = vpop.permute.xlu0 %2326  ;;  %v2317_v47 = vpop.permute.xlu1 %2316  ;;  %v1351_v16 = vsel %vm487_vm3, %v2323_v45, %v2324_v44 }
 0x6c8   : > { %v2329_v46 = vunpack.i.h.bf16 %v2327_v50  ;;  %v2328_v21 = vunpack.i.l.bf16 %v2327_v50  ;;  %v2319_v14 = vunpack.i.h.bf16 %v2317_v47  ;;  %v2318_v60 = vunpack.i.l.bf16 %v2317_v47 }
 0x6c9   : > { %2103 = vmatpush1.bf16.msra.mxu0 %v2102_v54  ;;  %2117 = vmatpush3.bf16.msra.mxu1 %v2116_v36 }
 0x6ca   : > { %2105 = vmatprep.subr.bf16.mxu0 %v2104_v53  ;;  %v1352_v35 = vsel %vm487_vm3, %v2328_v21, %v2323_v45  ;;  %2118 = vmatprep.subr.bf16.mxu1 %v2416_v33  ;;  %v1363_v62 = vsel %vm487_vm3, %v2318_v60, %v2319_v14  ;;  %v1353_v63 = vsel %vm487_vm3, %v2324_v44, %v2328_v21 }
 0x6cb   : > { %v1372_v18 = vpop.permute.xlu1 %1371  ;;  %v1365_v39 = vsel %vm487_vm3, %v2319_v14, %v2329_v46  ;;  %v1364_v34 = vsel %vm487_vm3, %v2329_v46, %v2318_v60  ;;  %v2108_v4 = vpack.c.bf16 %v1363_v62, %v1351_v16  ;;  %v1374_v59 = vpop.permute.xlu0 %1373 }
 0x6cc   : > { %v2122_v6 = vpack.c.bf16 %v1365_v39, %v1353_v63  ;;  %v2110_v7 = vpack.c.bf16 %v1364_v34, %v1352_v35  ;;  %v1375_v23 = vsel %vm487_vm3, %v1372_v18, %v1374_v59 }
 0x6cd   : > { %2107 = vmatpush1.bf16.msra.mxu0 %v2106_v42  ;;  %2120 = vmatpush3.bf16.msra.mxu1 %v2119_v12 }
 0x6ce   : > { %2109 = vmatprep.subr.bf16.mxu0 %v2108_v4  ;;  %2121 = vmatprep.subr.bf16.mxu1 %v2416_v33 }
 0x6cf   : > { %v1370_v22 = vpop.permute.xlu1 %1369 }
 0x6d0   : > { %v1376_v24 = vsel %vm487_vm3, %v1370_v22, %v1372_v18  ;;  %v1377_v26 = vsel %vm487_vm3, %v1374_v59, %v1370_v22 }
 0x6d1   : > { %2111 = vmatpush1.bf16.msra.mxu0 %v2110_v7  ;;  %2123 = vmatpush3.bf16.msra.mxu1 %v2122_v6 }
 0x6d2   : > { %1424 = vmatprep.subr.mxu0 %v1375_v23  ;;  %2007 = vmatprep.subr.mxu1 %v2412_v3 }
 0x6d5   : > { %1425 = vmatpush1.msra.mxu0 %v1376_v24  ;;  %2008 = vmatpush3.msra.mxu1 %v1377_v26 }
 0x6d6   : > { %1882 = vmatmul.mubr.msk.f32.vlgmr.msra.gmra.mrb[6].mxu0 %vm551_vm4, %v2862_v61  ;;  %2010 = vmatmul.mubr.msk.f32.vlgmr.msra.gmra.mrb[6].mxu1 %vm551_vm4, %v2862_v61 }
 0x6d7   : > { %1755 = vmatprep.mubr.f32.mxu0 %v2412_v3 }
 0x7a9   : > { %v1474_v33 = vpop.f32.mrb[6].mxu0  ;;  %v1545_v27 = vpop.f32.mrb[6].mxu1 }
 0x7aa   : > { %v1475_v29 = vadd.f32 %v1474_v33, %v2876_v2  ;;  %v1546_v31 = vadd.f32 %v1545_v27, %v2876_v2  ;;  %v1476_v32 = vpop.f32.mrb[7].mxu0  ;;  %v2011_v5 = vpop.f32.mrb[7].mxu1 }
 0x7ab   : > { %v1477_v8 = vadd.f32 %v1476_v32, %v2876_v2 }
 0x7ac   : > { %v1549_v9 = vmax.f32 %v1475_v29, 0.0  ;;  %v1551_v43 = vmax.f32 %v1546_v31, 0.0 }
 0x7ad   : > { %v1550_v49 = vmax.f32 %v1477_v8, 0.0 }
 0x7ae   : > { %v1552_v55 = vadd.f32 %v1549_v9, %v3032_v10  ;;  %v1554_v56 = vadd.f32 %v1551_v43, %v3035_v20 }
 0x7af   : > { %v1553_v57 = vadd.f32 %v1550_v49, %v3046_v52 }
 0x7b0   : > { %v3178_v61 = vmul.f32 %v1552_v55, %v2535_v13  ;;  %v1558_v3 = vmul.f32 %v1554_v56, %v2529_v11 }
 0x7b1   : > { %v3186_v2 = vmul.f32 %v1553_v57, %v2542_v15 }
 0x7b2   : > { %1563 = vrot.lane.b32.xlu0 %v1558_v3, %s2413_s30  ;;  %1571 = vrot.lane.b32.xlu1 %v3178_v61, %s2414_s23 }
 0x7b3   : > { %v2330_v11 = vpack.i.bf16 %v3186_v2, %v3178_v61 }
 0x7b6   : > { %1561 = vrot.lane.b32.xlu1 %v3186_v2, %s2413_s30  ;;  %1559 = vrot.lane.b32.xlu0 %v3178_v61, %s2413_s30 }
 0x7ba   : > { %1575 = vrot.lane.b32.xlu1 %v1558_v3, %s2414_s23  ;;  %1573 = vrot.lane.b32.xlu0 %v3186_v2, %s2414_s23 }
 0x7be   : > { %2331 = vrot.lane.b32.xlu1 %v2330_v11, %s2415_s24 }
 0x824   : > { %v1564_v13 = vpop.permute.xlu0 %1563  ;;  %v1572_v10 = vpop.permute.xlu1 %1571 }
 0x828   : > { %v1562_v15 = vpop.permute.xlu1 %1561  ;;  %v1560_v20 = vpop.permute.xlu0 %1559 }
 0x829   : > { %v1565_v52 = vsel %vm415_vm10, %v1562_v15, %v1564_v13  ;;  %v1566_v58 = vsel %vm415_vm10, %v1560_v20, %v1562_v15  ;;  %v1567_v40 = vsel %vm415_vm10, %v1564_v13, %v1560_v20 }
 0x82a   : > { %v3205_v41 = vmul.f32 %v1567_v40, %v2576_v25  ;;  %v1569_v17 = vmul.f32 %v1566_v58, %v2581_v28  ;;  %v1570_v51 = vmul.f32 %v1565_v52, %v2584_v30 }
 0x82c   : > { %v1576_v53 = vpop.permute.xlu1 %1575  ;;  %v1574_v44 = vpop.permute.xlu0 %1573  ;;  %v2335_v45 = vpack.i.bf16 %v1569_v17, %v3205_v41  ;;  %v2340_v28 = vpack.i.bf16 %v1558_v3, %v1570_v51  ;;  %v2355_v21 = vpack.i.bf16 %v1570_v51, %v1569_v17 }
 0x82d   : > { %v1577_v54 = vsel %vm428_vm15, %v1574_v44, %v1576_v53  ;;  %v1578_v36 = vsel %vm428_vm15, %v1572_v10, %v1574_v44  ;;  %v1579_v47 = vsel %vm428_vm15, %v1576_v53, %v1572_v10 }
 0x82e   : > { %v3215_v50 = vmul.f32 %v1578_v36, %v2599_v37  ;;  %v1581_v25 = vmul.f32 %v1577_v54, %v2602_v38  ;;  %2336 = vrot.lane.b32.xlu0 %v2335_v45, %s2415_s24  ;;  %v1582_v46 = vmul.f32 %v1579_v47, %v2625_v48  ;;  %v2350_v37 = vpack.i.bf16 %v1558_v3, %v3186_v2  ;;  %v1682_v48 = vld [vmem:[%s3297_s8] sm:$0xff] }
 0x82f   : > { %v2360_v38 = vpack.i.bf16 %v3178_v61, %v3205_v41 }
 0x830   : > { %v2345_v30 = vpack.i.bf16 %v1581_v25, %v3215_v50  ;;  %v2332_v14 = vpop.permute.xlu1 %2331  ;;  %v2132_v49 = vpack.c.bf16 %v1581_v25, %v3186_v2  ;;  %v2134_v10 = vpack.c.bf16 %v3215_v50, %v3178_v61  ;;  %v1555_v61 = vld [vmem:[%s3296_s7] sm:$0xff] }
 0x831   : > { %v2334_v60 = vunpack.i.h.bf16 %v2332_v14  ;;  %v2333_v12 = vunpack.i.l.bf16 %v2332_v14 }
 0x832   : > { %2341 = vrot.lane.b32.xlu0 %v2340_v28, %s2415_s24  ;;  %2346 = vrot.lane.b32.xlu1 %v2345_v30, %s2415_s24 }
 0x833   : > { %v1602_v62 = vsel %vm441_vm2, %v2333_v12, %v2334_v60 }
 0x836   : > { %1611 = vrot.lane.b32.xlu0 %v1582_v46, %s2415_s24  ;;  %2356 = vrot.lane.b32.xlu1 %v2355_v21, %s2417_s17 }
 0x83a   : > { %2351 = vrot.lane.b32.xlu0 %v2350_v37, %s2417_s17  ;;  %2361 = vrot.lane.b32.xlu1 %v2360_v38, %s2417_s17 }
 0x83e   : > { %1654 = vrot.lane.b32.xlu0 %v1581_v25, %s2417_s17  ;;  %1656 = vrot.lane.b32.xlu1 %v1582_v46, %s2417_s17 }
 0x842   : > { %1652 = vrot.lane.b32.xlu0 %v3215_v50, %s2417_s17  ;;  %1685 = vperm.xlu1 %2224, %v1682_v48  }
 0x8a0   : > { %v2337_v42 = vpop.permute.xlu0 %2336 }
 0x8a1   : > { %v2339_v35 = vunpack.i.h.bf16 %v2337_v42  ;;  %v2338_v18 = vunpack.i.l.bf16 %v2337_v42 }
 0x8a3   : > { %v1590_v16 = vsel %vm441_vm2, %v2338_v18, %v2339_v35 }
 0x8a4   : > { %v2347_v63 = vpop.permute.xlu1 %2346  ;;  %v2342_v39 = vpop.permute.xlu0 %2341  ;;  %v2124_v34 = vpack.c.bf16 %v1602_v62, %v1590_v16 }
 0x8a5   : > { %v2349_v4 = vunpack.i.h.bf16 %v2347_v63  ;;  %v2348_v59 = vunpack.i.l.bf16 %v2347_v63  ;;  %v2344_v6 = vunpack.i.h.bf16 %v2342_v39  ;;  %v2343_v7 = vunpack.i.l.bf16 %v2342_v39 }
 0x8a6   : > { %2125 = vmatprep.subr.bf16.mxu0 %v2124_v34 }
 0x8a7   : > { %v1603_v22 = vsel %vm441_vm2, %v2344_v6, %v2333_v12  ;;  %v1591_v23 = vsel %vm441_vm2, %v2343_v7, %v2338_v18  ;;  %v1614_v24 = vsel %vm441_vm2, %v2348_v59, %v2349_v4 }
 0x8a8   : > { %v2126_v26 = vpack.c.bf16 %v1603_v22, %v1591_v23  ;;  %v2357_v33 = vpop.permute.xlu1 %2356  ;;  %v1612_v27 = vpop.permute.xlu0 %1611  ;;  %v2128_v29 = vpack.c.bf16 %v1569_v17, %v1614_v24 }
 0x8a9   : > { %v1615_v31 = vsel %vm441_vm2, %v1612_v27, %v2348_v59  ;;  %v2359_v32 = vunpack.i.h.bf16 %v2357_v33  ;;  %v2358_v5 = vunpack.i.l.bf16 %v2357_v33 }
 0x8aa   : > { %2127 = vmatpush1.bf16.msra.mxu0 %v2126_v26  ;;  %v2130_v8 = vpack.c.bf16 %v3205_v41, %v1615_v31 }
 0x8ab   : > { %2129 = vmatprep.subr.bf16.mxu0 %v2128_v29  ;;  %v1634_v11 = vsel %vm487_vm3, %v2358_v5, %v2359_v32 }
 0x8ac   : > { %v2362_v9 = vpop.permute.xlu1 %2361  ;;  %v2352_v43 = vpop.permute.xlu0 %2351 }
 0x8ad   : > { %v2364_v55 = vunpack.i.h.bf16 %v2362_v9  ;;  %v2363_v56 = vunpack.i.l.bf16 %v2362_v9  ;;  %v2354_v3 = vunpack.i.h.bf16 %v2352_v43  ;;  %v2353_v57 = vunpack.i.l.bf16 %v2352_v43 }
 0x8ae   : > { %2131 = vmatpush1.bf16.msra.mxu0 %v2130_v8 }
 0x8af   : > { %2133 = vmatprep.subr.bf16.mxu0 %v2132_v49  ;;  %v1646_v13 = vsel %vm487_vm3, %v2353_v57, %v2354_v3  ;;  %v1635_v2 = vsel %vm487_vm3, %v2363_v56, %v2358_v5  ;;  %v1647_v52 = vsel %vm487_vm3, %v2364_v55, %v2353_v57 }
 0x8b0   : > { %v1655_v15 = vpop.permute.xlu0 %1654  ;;  %v2136_v20 = vpack.c.bf16 %v1646_v13, %v1634_v11  ;;  %v1657_v58 = vpop.permute.xlu1 %1656  ;;  %v2138_v40 = vpack.c.bf16 %v1647_v52, %v1635_v2 }
 0x8b1   : > { %v1658_v17 = vsel %vm487_vm3, %v1655_v15, %v1657_v58 }
 0x8b2   : > { %2135 = vmatpush1.bf16.msra.mxu0 %v2134_v10 }
 0x8b3   : > { %2137 = vmatprep.subr.bf16.mxu0 %v2136_v20 }
 0x8b4   : > { %v1653_v41 = vpop.permute.xlu0 %1652 }
 0x8b5   : > { %v1659_v51 = vsel %vm487_vm3, %v1653_v41, %v1655_v15 }
 0x8b6   : > { %2139 = vmatpush1.bf16.msra.mxu0 %v2138_v40 }
 0x8b7   : > { %1707 = vmatprep.subr.mxu0 %v1658_v17 }
 0x8ba   : > { %1708 = vmatpush1.msra.mxu0 %v1659_v51 }
 0x8bb   : > { %1884 = vmatmul.mubr.msk.f32.vlgmr.msra.gmra.mrb[8].mxu0 %vm551_vm4, %v1555_v61 }
 0x8c1   : > { %v1686_v53 = vpop.permute.xlu1 %1685 }
 0x98e   : > { %v1757_v44 = vpop.f32.mrb[8].mxu0 }
 0x98f   : > { %v1758_v45 = vadd.f32 %v1757_v44, %v1686_v53  ;;  %v1759_v54 = vpop.f32.mrb[9].mxu0 }
 0x990   : > { %v1760_v36 = vadd.f32 %v1759_v54, %v1686_v53 }
 0x991   : > { %v1762_v50 = vmul.f32 0.5, %v1758_v45 }
 0x992   : > { %v1763_v25 = vmul.f32 0.5, %v1760_v36 }
 0x993   : > { %2366 = vtanh.f32 %v1762_v50 }
 0x994   : > { %2368 = vtanh.f32 %v1763_v25 }
 0x99d   : > { %v2367_v28 = vpop.eup %2366 }
 0x99e   : > { %v2369_v30 = vpop.eup %2368  ;;  %v1766_v47 = vmul.f32 0.5, %v2367_v28 }
 0x99f   : > { %v1767_v46 = vmul.f32 0.5, %v2369_v30 }
 0x9a0   : > { %v1768_v21 = vadd.f32 0.5, %v1766_v47 }
 0x9a1   : > { %v1769_v19 = vadd.f32 0.5, %v1767_v46 }
 0x9a2   : > { %v1772_v37 = vadd.f32 %v1768_v21, %v2513_v0 }
 0x9a3   : > { %v1773_v38 = vadd.f32 %v1769_v19, %v2515_v1 }
 0x9a4   : > { %v1774_v48 = vmax.f32 %v1772_v37, 0.0001 }
 0x9a5   : > { %v1775_v14 = vmax.f32 %v1773_v38, 0.0001 }
 0x9a6   : > { %v1776_v60 = vmin.f32 %v1774_v48, 1.0 }
 0x9a7   : > { %v1777_v12 = vmin.f32 %v1775_v14, 1.0 }
 0x9a8   : > { %1780 = vrot.lane.b32.xlu0 %v1776_v60, %s2420_s10 }
 0x9a9   : > { %1782 = vrot.lane.b32.xlu1 %v1777_v12, %s2420_s10 }
 0xa1a   : > { %v1781_v42 = vpop.permute.xlu0 %1780 }
 0xa1b   : > { %v1783_v35 = vpop.permute.xlu1 %1782 }
 0xa1c   : > { %v1785_v18 = vsel %vm1784_vm5, %v1781_v42, %v1783_v35 }
 0xa1d   : > { %1787 = vst [vmem:[%s2511_s29] sm:$0xff] %v1785_v18 }
 0xa1e PF: > { %s19_s13 = sadd.s32 1, %s2410_s13   ;;  %s3299_s30 = smov %s2402_s11 }
 0xa1f   : > { %p16_p6 = scmp.ge.s32.totalorder %s19_s13, 6   ;;  %s3300_s10 = smov %s2406_s12 }
 0xa20   : > { %s3301_s11 = smov %s3304_s14  ;;  %s3302_s12 = smov %s3308_s15 }
 0xa21   :  { %18 = sbr.rel (!%p16_p6) target bundleno = 3 (0x3), region = 122 }
 0xa28   :  { %1813 = vsyncmov [#allocation4] }
 0xa2b   :  { %s1814_s29 = vpop.sfrf %1813 }
 0xa2c   :  { %p1887_p7 = scmp.ne.s32.totalorder %s1814_s29, 0 }
 0xa2e   :  { %1818 = shalt.err (%p1887_p7)  }

</bundles_post_ra>
